<compile_context>
chip_gen: v6e
topology: v6e:2x2x1
jax: 0.10.0
libtpu: 0.0.40
codegen_flags: <defaults>
</compile_context>

<pallas_src>
import functools

import jax
import jax.numpy as jnp
from jax.experimental import pallas as pl
from jax.experimental.pallas import tpu as pltpu

# ---------------- small config consistent with LlamaModel ----------------
VOCAB = 128
HIDDEN = 128
N_HEADS = 4
N_KV_HEADS = 2
HEAD_DIM = HIDDEN // N_HEADS            # 32
INTERMEDIATE = 256
N_LAYERS = 2
SEQ = 8
RMS_EPS = 1e-5
ROPE_THETA = 10000.0
SCALING = HEAD_DIM ** -0.5
Q_SIZE = N_HEADS * HEAD_DIM             # 128
KV_SIZE = N_KV_HEADS * HEAD_DIM         # 64
GU_SIZE = 2 * INTERMEDIATE              # 512 (merged gate|up)


# ---------------- in-kernel helpers ----------------
def _rmsnorm(x, w, eps):
    var = jnp.mean(x * x, axis=-1, keepdims=True)
    return x * jax.lax.rsqrt(var + eps) * w


def _rope_rotate_half(x, cos, sin):
    """Neox RoPE on a head-batched (n, S, D) tensor; cos/sin are (1, S, D)."""
    half = x.shape[-1] // 2
    x1 = x[..., :half]
    x2 = x[..., half:]
    rot = jnp.concatenate([-x2, x1], axis=-1)       # rotate_half: [-x2, x1]
    return x * cos + rot * sin


# ---------------- fused whole-model kernel (grid over layers) -------------
def _llama_model_kernel(x_ref, cos_ref, sin_ref, ln1_ref, ln2_ref,
                        q_w_ref, k_w_ref, v_w_ref, o_w_ref,
                        gate_up_w_ref, down_w_ref, final_w_ref,
                        out_ref, hid_ref, res_ref,
                        *, eps, scale, n_heads, n_kv_heads, head_dim,
                        hidden_size, intermediate, n_layers, seq):
    f32 = jnp.float32
    bf16 = jnp.bfloat16
    layer = pl.program_id(0)

    # ---- layer 0: load embeddings into the resident VMEM hidden state ----
    @pl.when(layer == 0)
    def _():
        hid_ref[...] = x_ref[...]
        res_ref[...] = jnp.zeros_like(res_ref)

    # ---- fused residual add + input RMSNorm -------------------------------
    x1 = hid_ref[...] + res_ref[...]                 # (S, HIDDEN) f32
    normed1 = _rmsnorm(x1, ln1_ref[...], eps)
    nb = normed1.astype(bf16)
    nb_q = jnp.broadcast_to(nb[None], (n_heads, seq, hidden_size))
    nb_kv = jnp.broadcast_to(nb[None], (n_kv_heads, seq, hidden_size))

    # ---- head-batched Q/K/V projections (bf16 MXU, f32 accumulation) ------
    q = jnp.einsum('hsc,hcd->hsd', nb_q, q_w_ref[...],
                   preferred_element_type=f32)       # (H,  S, D)
    k = jnp.einsum('hsc,hcd->hsd', nb_kv, k_w_ref[...],
                   preferred_element_type=f32)       # (KV, S, D)
    v = jnp.einsum('hsc,hcd->hsd', nb_kv, v_w_ref[...],
                   preferred_element_type=f32)       # (KV, S, D)

    # ---- RoPE: compact (S, D) tables broadcast over heads -----------------
    cos = cos_ref[...][None]                         # (1, S, D)
    sin = sin_ref[...][None]
    q = _rope_rotate_half(q, cos, sin)
    k = _rope_rotate_half(k, cos, sin)

    # ---- GQA expansion of K/V to all query heads ---------------------------
    group = n_heads // n_kv_heads

    def gqa_expand(t):
        t = jnp.broadcast_to(t[:, None], (n_kv_heads, group, seq, head_dim))
        return t.reshape(n_heads, seq, head_dim)     # leading-dim-only reshape

    kx = gqa_expand(k)
    vx = gqa_expand(v)

    # ---- batched-head causal attention -------------------------------------
    sc = jnp.einsum('hqd,hkd->hqk', q.astype(bf16), kx.astype(bf16),
                    preferred_element_type=f32) * scale        # (H, S, S)
    row = jax.lax.broadcasted_iota(jnp.int32, (seq, seq), 0)
    col = jax.lax.broadcasted_iota(jnp.int32, (seq, seq), 1)
    sc = jnp.where((row >= col)[None], sc, jnp.float32(-1e30))
    m = jnp.max(sc, axis=-1, keepdims=True)
    p = jnp.exp(sc - m)
    p = p * pl.reciprocal(jnp.sum(p, axis=-1, keepdims=True), approx=True)
    o = jnp.einsum('hqk,hkd->hqd', p.astype(bf16), vx.astype(bf16),
                   preferred_element_type=f32)                  # (H, S, D)

    # ---- output projection (head-batched matmul + head-sum) ----------------
    attn_out = jnp.sum(
        jnp.einsum('hsd,hdc->hsc', o.astype(bf16), o_w_ref[...],
                   preferred_element_type=f32), axis=0)         # (S, HIDDEN)

    # ---- fused residual add + post-attention RMSNorm -----------------------
    x2 = attn_out + x1
    normed2 = _rmsnorm(x2, ln2_ref[...], eps)

    # ---- SwiGLU MLP with merged gate|up projection --------------------------
    gu = jnp.dot(normed2.astype(bf16), gate_up_w_ref[...],
                 preferred_element_type=f32)                    # (S, 2*INTER)
    g = gu[:, :intermediate]                                    # 128-aligned
    u = gu[:, intermediate:]
    hact = (g * jax.nn.sigmoid(g) * u).astype(bf16)             # silu(g) * u
    mlp_out = jnp.dot(hact, down_w_ref[...], preferred_element_type=f32)

    # ---- carry hidden / residual in VMEM to the next layer ------------------
    hid_ref[...] = mlp_out
    res_ref[...] = x2

    # ---- final RMSNorm fused at the last layer ------------------------------
    @pl.when(layer == n_layers - 1)
    def _():
        out_ref[...] = _rmsnorm(mlp_out + x2, final_w_ref[...], eps)


# ---------------- wrapper ----------------
def llama_pallas_forward(params, hidden, cos, sin):
    kernel = functools.partial(
        _llama_model_kernel, eps=RMS_EPS, scale=SCALING,
        n_heads=N_HEADS, n_kv_heads=N_KV_HEADS, head_dim=HEAD_DIM,
        hidden_size=HIDDEN, intermediate=INTERMEDIATE,
        n_layers=N_LAYERS, seq=SEQ)

    def stacked(shape):                   # per-layer weight: leading layer dim
        nd = len(shape)
        return pl.BlockSpec((None,) + shape, lambda l, _n=nd: (l,) + (0,) * _n)

    def shared(shape):                    # same block every layer (DMA'd once)
        nd = len(shape)
        return pl.BlockSpec(shape, lambda l, _n=nd: (0,) * _n)

    matmul_flops = 2 * SEQ * (HIDDEN * (Q_SIZE + 2 * KV_SIZE)
                              + Q_SIZE * HIDDEN
                              + HIDDEN * GU_SIZE
                              + INTERMEDIATE * HIDDEN)
    attn_flops = 4 * N_HEADS * SEQ * SEQ * HEAD_DIM
    weight_bytes = 2 * (N_HEADS * HIDDEN * HEAD_DIM
                        + 2 * N_KV_HEADS * HIDDEN * HEAD_DIM
                        + N_HEADS * HEAD_DIM * HIDDEN
                        + HIDDEN * GU_SIZE + INTERMEDIATE * HIDDEN)
    cost = pl.CostEstimate(
        flops=N_LAYERS * (matmul_flops + attn_flops),
        transcendentals=N_LAYERS * (N_HEADS * SEQ * SEQ + SEQ * INTERMEDIATE),
        bytes_accessed=N_LAYERS * (weight_bytes + 2 * 4 * HIDDEN)
        + 4 * (3 * SEQ * HIDDEN + 2 * SEQ * HEAD_DIM + HIDDEN))

    return pl.pallas_call(
        kernel,
        out_shape=jax.ShapeDtypeStruct((SEQ, HIDDEN), jnp.float32),
        grid_spec=pltpu.PrefetchScalarGridSpec(
            num_scalar_prefetch=0,
            grid=(N_LAYERS,),
            in_specs=[
                shared((SEQ, HIDDEN)),                        # embedded tokens
                shared((SEQ, HEAD_DIM)),                      # cos
                shared((SEQ, HEAD_DIM)),                      # sin
                stacked((1, HIDDEN)),                         # input_layernorm
                stacked((1, HIDDEN)),                         # post_attn_layernorm
                stacked((N_HEADS, HIDDEN, HEAD_DIM)),         # q_proj (head-major)
                stacked((N_KV_HEADS, HIDDEN, HEAD_DIM)),      # k_proj
                stacked((N_KV_HEADS, HIDDEN, HEAD_DIM)),      # v_proj
                stacked((N_HEADS, HEAD_DIM, HIDDEN)),         # o_proj (head-major)
                stacked((HIDDEN, GU_SIZE)),                   # gate_up_proj
                stacked((INTERMEDIATE, HIDDEN)),              # down_proj
                shared((1, HIDDEN)),                          # final norm weight
            ],
            out_specs=shared((SEQ, HIDDEN)),
            scratch_shapes=[pltpu.VMEM((SEQ, HIDDEN), jnp.float32),   # hidden
                            pltpu.VMEM((SEQ, HIDDEN), jnp.float32)],  # residual
        ),
        compiler_params=pltpu.CompilerParams(
            dimension_semantics=("arbitrary",),        # layers are sequential
            vmem_limit_bytes=32 * 1024 * 1024),
        cost_estimate=cost,
    )(hidden, cos, sin, params["ln1"], params["ln2"],
      params["q_w"], params["k_w"], params["v_w"], params["o_w"],
      params["gate_up_w"], params["down_w"], params["final_norm"])


# ---------------- model glue ----------------
def init_params(key):
    def w(k, shape):
        return (jax.random.normal(k, shape, jnp.float32) * 0.02
                ).astype(jnp.bfloat16)

    ks = jax.random.split(key, 7)
    return {
        "embed": jax.random.normal(ks[0], (VOCAB, HIDDEN), jnp.float32) * 0.02,
        "ln1": jnp.ones((N_LAYERS, 1, HIDDEN), jnp.float32),
        "ln2": jnp.ones((N_LAYERS, 1, HIDDEN), jnp.float32),
        "final_norm": jnp.ones((1, HIDDEN), jnp.float32),
        "q_w": w(ks[1], (N_LAYERS, N_HEADS, HIDDEN, HEAD_DIM)),
        "k_w": w(ks[2], (N_LAYERS, N_KV_HEADS, HIDDEN, HEAD_DIM)),
        "v_w": w(ks[3], (N_LAYERS, N_KV_HEADS, HIDDEN, HEAD_DIM)),
        "o_w": w(ks[4], (N_LAYERS, N_HEADS, HEAD_DIM, HIDDEN)),
        "gate_up_w": w(ks[5], (N_LAYERS, HIDDEN, GU_SIZE)),
        "down_w": w(ks[6], (N_LAYERS, INTERMEDIATE, HIDDEN)),
    }


def rope_tables(positions):
    """Compact neox cos/sin tables of shape (S, HEAD_DIM)."""
    inv_freq = 1.0 / (ROPE_THETA ** (
        jnp.arange(0, HEAD_DIM, 2, dtype=jnp.float32) / HEAD_DIM))
    freqs = positions.astype(jnp.float32)[:, None] * inv_freq[None, :]  # (S, D/2)
    cos = jnp.cos(freqs)
    sin = jnp.sin(freqs)
    return (jnp.concatenate([cos, cos], axis=-1),
            jnp.concatenate([sin, sin], axis=-1))


def llama_forward(params, input_ids, positions):
    hidden = jnp.take(params["embed"], input_ids, axis=0)   # embedding gather
    cos, sin = rope_tables(positions)
    return llama_pallas_forward(params, hidden, cos, sin)


if __name__ == "__main__":
    key = jax.random.PRNGKey(0)
    pkey, ikey = jax.random.split(key)
    params = init_params(pkey)
    input_ids = jax.random.randint(ikey, (SEQ,), 0, VOCAB, dtype=jnp.int32)
    positions = jnp.arange(SEQ, dtype=jnp.int32)

    fwd = jax.jit(llama_forward)
    out = fwd(params, input_ids, positions)
    jax.block_until_ready(out)
    assert out.shape == (SEQ, HIDDEN)
    assert bool(jnp.all(jnp.isfinite(out)))
    print("KERNEL_OK")
</pallas_src>

<mosaic_0001>
module attributes {stable_mosaic.version = 11 : i64} {
  func.func @_llama_model_kernel(%arg0: i32, %arg1: memref<8x128xf32, #tpu.memory_space<vmem>>, %arg2: memref<8x32xf32, #tpu.memory_space<vmem>>, %arg3: memref<8x32xf32, #tpu.memory_space<vmem>>, %arg4: memref<1x1x128xf32, #tpu.memory_space<vmem>>, %arg5: memref<1x1x128xf32, #tpu.memory_space<vmem>>, %arg6: memref<1x4x128x32xbf16, #tpu.memory_space<vmem>>, %arg7: memref<1x2x128x32xbf16, #tpu.memory_space<vmem>>, %arg8: memref<1x2x128x32xbf16, #tpu.memory_space<vmem>>, %arg9: memref<1x4x32x128xbf16, #tpu.memory_space<vmem>>, %arg10: memref<1x128x512xbf16, #tpu.memory_space<vmem>>, %arg11: memref<1x256x128xbf16, #tpu.memory_space<vmem>>, %arg12: memref<1x128xf32, #tpu.memory_space<vmem>>, %arg13: memref<8x128xf32, #tpu.memory_space<vmem>>, %arg14: memref<8x128xf32, #tpu.memory_space<vmem>>, %arg15: memref<8x128xf32, #tpu.memory_space<vmem>>) attributes {dimension_semantics = [#tpu.dimension_semantics<arbitrary>], iteration_bounds = array<i64: 2>, scalar_prefetch = 0 : i64, scratch_operands = 2 : i64, tpu.core_type = #tpu.core_type<tc>, window_params = [{pipeline_mode = #tpu.pipeline_mode<synchronous>, transform_indices = @transform_0, window_bounds = array<i64: 8, 128>}, {pipeline_mode = #tpu.pipeline_mode<synchronous>, transform_indices = @transform_1, window_bounds = array<i64: 8, 32>}, {pipeline_mode = #tpu.pipeline_mode<synchronous>, transform_indices = @transform_2, window_bounds = array<i64: 8, 32>}, {transform_indices = @transform_3, window_bounds = array<i64: 1, 1, 128>}, {transform_indices = @transform_4, window_bounds = array<i64: 1, 1, 128>}, {transform_indices = @transform_5, window_bounds = array<i64: 1, 4, 128, 32>}, {transform_indices = @transform_6, window_bounds = array<i64: 1, 2, 128, 32>}, {transform_indices = @transform_7, window_bounds = array<i64: 1, 2, 128, 32>}, {transform_indices = @transform_8, window_bounds = array<i64: 1, 4, 32, 128>}, {transform_indices = @transform_9, window_bounds = array<i64: 1, 128, 512>}, {transform_indices = @transform_10, window_bounds = array<i64: 1, 256, 128>}, {pipeline_mode = #tpu.pipeline_mode<synchronous>, transform_indices = @transform_11, window_bounds = array<i64: 1, 128>}, {pipeline_mode = #tpu.pipeline_mode<synchronous>, transform_indices = @transform_12, window_bounds = array<i64: 8, 128>}]} {
    %c0_i32 = arith.constant 0 : i32
    %0 = arith.cmpi eq, %arg0, %c0_i32 : i32
    %1 = arith.extui %0 : i1 to i32
    %c0_i32_0 = arith.constant 0 : i32
    %2 = arith.cmpi ne, %1, %c0_i32_0 : i32
    scf.if %2 {
      %c0_62 = arith.constant 0 : index
      %c0_63 = arith.constant 0 : index
      %136 = vector.load %arg1[%c0_62, %c0_63] : memref<8x128xf32, #tpu.memory_space<vmem>>, vector<8x128xf32>
      %c0_64 = arith.constant 0 : index
      %c0_65 = arith.constant 0 : index
      %137 = vector.load %arg14[%c0_64, %c0_65] : memref<8x128xf32, #tpu.memory_space<vmem>>, vector<8x128xf32>
      tpu.vector_store %arg14[%c0_64, %c0_65], %136 {strides = array<i32>} : memref<8x128xf32, #tpu.memory_space<vmem>>, vector<8x128xf32>,
      %cst_66 = arith.constant 0.000000e+00 : f32
      %138 = vector.broadcast %cst_66 : f32 to vector<8x128xf32>
      %c0_67 = arith.constant 0 : index
      %c0_68 = arith.constant 0 : index
      %139 = vector.load %arg15[%c0_67, %c0_68] : memref<8x128xf32, #tpu.memory_space<vmem>>, vector<8x128xf32>
      tpu.vector_store %arg15[%c0_67, %c0_68], %138 {strides = array<i32>} : memref<8x128xf32, #tpu.memory_space<vmem>>, vector<8x128xf32>,
    } else {
    }
    %c0 = arith.constant 0 : index
    %c0_1 = arith.constant 0 : index
    %3 = vector.load %arg14[%c0, %c0_1] : memref<8x128xf32, #tpu.memory_space<vmem>>, vector<8x128xf32>
    %c0_2 = arith.constant 0 : index
    %c0_3 = arith.constant 0 : index
    %4 = vector.load %arg15[%c0_2, %c0_3] : memref<8x128xf32, #tpu.memory_space<vmem>>, vector<8x128xf32>
    %5 = arith.addf %3, %4 : vector<8x128xf32>
    %c0_4 = arith.constant 0 : index
    %c0_5 = arith.constant 0 : index
    %c0_6 = arith.constant 0 : index
    %6 = vector.load %arg4[%c0_4, %c0_5, %c0_6] : memref<1x1x128xf32, #tpu.memory_space<vmem>>, vector<1x1x128xf32>
    %7 = vector.shape_cast %6 : vector<1x1x128xf32> to vector<1x128xf32>
    %8 = arith.mulf %5, %5 : vector<8x128xf32>
    %cst = arith.constant dense<0.000000e+00> : vector<8xf32>
    %9 = vector.multi_reduction <add>, %8, %cst [1] : vector<8x128xf32> to vector<8xf32>
    %10 = vector.shape_cast %9 : vector<8xf32> to vector<8x1xf32>
    %cst_7 = arith.constant 1.280000e+02 : f32
    %11 = vector.broadcast %cst_7 : f32 to vector<8x1xf32>
    %12 = arith.divf %10, %11 : vector<8x1xf32>
    %cst_8 = arith.constant 9.99999974E-6 : f32
    %13 = vector.broadcast %cst_8 : f32 to vector<8x1xf32>
    %14 = arith.addf %12, %13 : vector<8x1xf32>
    %15 = math.rsqrt %14 : vector<8x1xf32>
    %16 = vector.broadcast %15 : vector<8x1xf32> to vector<8x128xf32>
    %17 = arith.mulf %5, %16 : vector<8x128xf32>
    %18 = vector.broadcast %7 : vector<1x128xf32> to vector<8x128xf32>
    %19 = arith.mulf %17, %18 : vector<8x128xf32>
    %20 = arith.truncf %19 : vector<8x128xf32> to vector<8x128xbf16>
    %21 = vector.shape_cast %20 : vector<8x128xbf16> to vector<1x8x128xbf16>
    %22 = vector.shape_cast %21 : vector<1x8x128xbf16> to vector<1x8x128xbf16>
    %23 = vector.broadcast %22 : vector<1x8x128xbf16> to vector<4x8x128xbf16>
    %24 = vector.shape_cast %20 : vector<8x128xbf16> to vector<1x8x128xbf16>
    %25 = vector.shape_cast %24 : vector<1x8x128xbf16> to vector<1x8x128xbf16>
    %26 = vector.broadcast %25 : vector<1x8x128xbf16> to vector<2x8x128xbf16>
    %c0_9 = arith.constant 0 : index
    %c0_10 = arith.constant 0 : index
    %c0_11 = arith.constant 0 : index
    %c0_12 = arith.constant 0 : index
    %27 = vector.load %arg6[%c0_9, %c0_10, %c0_11, %c0_12] : memref<1x4x128x32xbf16, #tpu.memory_space<vmem>>, vector<1x4x128x32xbf16>
    %28 = vector.shape_cast %27 : vector<1x4x128x32xbf16> to vector<4x128x32xbf16>
    "tpu.trace_start"() <{level = 10 : i32, message = "hsc,hcd->hsd"}> : () -> ()
    %cst_13 = arith.constant dense<0.000000e+00> : vector<4x8x32xf32>
    %29 = tpu.matmul %23, %28, %cst_13 {dimension_numbers = #tpu.dot_dimension_numbers<[2], [1], [1], [2], [0, 0, 0, 1, 1, 2], [0], [0]>} : vector<4x8x128xbf16>, vector<4x128x32xbf16>, vector<4x8x32xf32> -> vector<4x8x32xf32>
    "tpu.trace_stop"() : () -> ()
    %c0_14 = arith.constant 0 : index
    %c0_15 = arith.constant 0 : index
    %c0_16 = arith.constant 0 : index
    %c0_17 = arith.constant 0 : index
    %30 = vector.load %arg7[%c0_14, %c0_15, %c0_16, %c0_17] : memref<1x2x128x32xbf16, #tpu.memory_space<vmem>>, vector<1x2x128x32xbf16>
    %31 = vector.shape_cast %30 : vector<1x2x128x32xbf16> to vector<2x128x32xbf16>
    "tpu.trace_start"() <{level = 10 : i32, message = "hsc,hcd->hsd"}> : () -> ()
    %cst_18 = arith.constant dense<0.000000e+00> : vector<2x8x32xf32>
    %32 = tpu.matmul %26, %31, %cst_18 {dimension_numbers = #tpu.dot_dimension_numbers<[2], [1], [1], [2], [0, 0, 0, 1, 1, 2], [0], [0]>} : vector<2x8x128xbf16>, vector<2x128x32xbf16>, vector<2x8x32xf32> -> vector<2x8x32xf32>
    "tpu.trace_stop"() : () -> ()
    %c0_19 = arith.constant 0 : index
    %c0_20 = arith.constant 0 : index
    %c0_21 = arith.constant 0 : index
    %c0_22 = arith.constant 0 : index
    %33 = vector.load %arg8[%c0_19, %c0_20, %c0_21, %c0_22] : memref<1x2x128x32xbf16, #tpu.memory_space<vmem>>, vector<1x2x128x32xbf16>
    %34 = vector.shape_cast %33 : vector<1x2x128x32xbf16> to vector<2x128x32xbf16>
    "tpu.trace_start"() <{level = 10 : i32, message = "hsc,hcd->hsd"}> : () -> ()
    %cst_23 = arith.constant dense<0.000000e+00> : vector<2x8x32xf32>
    %35 = tpu.matmul %26, %34, %cst_23 {dimension_numbers = #tpu.dot_dimension_numbers<[2], [1], [1], [2], [0, 0, 0, 1, 1, 2], [0], [0]>} : vector<2x8x128xbf16>, vector<2x128x32xbf16>, vector<2x8x32xf32> -> vector<2x8x32xf32>
    "tpu.trace_stop"() : () -> ()
    %c0_24 = arith.constant 0 : index
    %c0_25 = arith.constant 0 : index
    %36 = vector.load %arg2[%c0_24, %c0_25] : memref<8x32xf32, #tpu.memory_space<vmem>>, vector<8x32xf32>
    %37 = vector.shape_cast %36 : vector<8x32xf32> to vector<1x8x32xf32>
    %c0_26 = arith.constant 0 : index
    %c0_27 = arith.constant 0 : index
    %38 = vector.load %arg3[%c0_26, %c0_27] : memref<8x32xf32, #tpu.memory_space<vmem>>, vector<8x32xf32>
    %39 = vector.shape_cast %38 : vector<8x32xf32> to vector<1x8x32xf32>
    %40 = vector.extract_strided_slice %29 {offsets = [0, 0, 0], sizes = [4, 8, 16], strides = [1, 1, 1]} : vector<4x8x32xf32> to vector<4x8x16xf32>
    %41 = vector.extract_strided_slice %29 {offsets = [0, 0, 16], sizes = [4, 8, 16], strides = [1, 1, 1]} : vector<4x8x32xf32> to vector<4x8x16xf32>
    %cst_28 = arith.constant 0.000000e+00 : f32
    %42 = vector.broadcast %cst_28 : f32 to vector<4x8x16xf32>
    %43 = arith.subf %42, %41 : vector<4x8x16xf32>
    %44 = tpu.concatenate %43, %40 in 2 : vector<4x8x16xf32>, vector<4x8x16xf32> -> vector<4x8x32xf32>
    %45 = vector.broadcast %37 : vector<1x8x32xf32> to vector<4x8x32xf32>
    %46 = arith.mulf %29, %45 : vector<4x8x32xf32>
    %47 = vector.broadcast %39 : vector<1x8x32xf32> to vector<4x8x32xf32>
    %48 = arith.mulf %44, %47 : vector<4x8x32xf32>
    %49 = arith.addf %46, %48 : vector<4x8x32xf32>
    %50 = vector.extract_strided_slice %32 {offsets = [0, 0, 0], sizes = [2, 8, 16], strides = [1, 1, 1]} : vector<2x8x32xf32> to vector<2x8x16xf32>
    %51 = vector.extract_strided_slice %32 {offsets = [0, 0, 16], sizes = [2, 8, 16], strides = [1, 1, 1]} : vector<2x8x32xf32> to vector<2x8x16xf32>
    %cst_29 = arith.constant 0.000000e+00 : f32
    %52 = vector.broadcast %cst_29 : f32 to vector<2x8x16xf32>
    %53 = arith.subf %52, %51 : vector<2x8x16xf32>
    %54 = tpu.concatenate %53, %50 in 2 : vector<2x8x16xf32>, vector<2x8x16xf32> -> vector<2x8x32xf32>
    %55 = vector.broadcast %37 : vector<1x8x32xf32> to vector<2x8x32xf32>
    %56 = arith.mulf %32, %55 : vector<2x8x32xf32>
    %57 = vector.broadcast %39 : vector<1x8x32xf32> to vector<2x8x32xf32>
    %58 = arith.mulf %54, %57 : vector<2x8x32xf32>
    %59 = arith.addf %56, %58 : vector<2x8x32xf32>
    %60 = vector.shape_cast %59 : vector<2x8x32xf32> to vector<2x1x8x32xf32>
    %61 = vector.shape_cast %60 : vector<2x1x8x32xf32> to vector<2x1x8x32xf32>
    %62 = vector.broadcast %61 : vector<2x1x8x32xf32> to vector<2x2x8x32xf32>
    %63 = vector.shape_cast %62 : vector<2x2x8x32xf32> to vector<4x8x32xf32>
    %64 = vector.shape_cast %35 : vector<2x8x32xf32> to vector<2x1x8x32xf32>
    %65 = vector.shape_cast %64 : vector<2x1x8x32xf32> to vector<2x1x8x32xf32>
    %66 = vector.broadcast %65 : vector<2x1x8x32xf32> to vector<2x2x8x32xf32>
    %67 = vector.shape_cast %66 : vector<2x2x8x32xf32> to vector<4x8x32xf32>
    %68 = arith.truncf %49 : vector<4x8x32xf32> to vector<4x8x32xbf16>
    %69 = arith.truncf %63 : vector<4x8x32xf32> to vector<4x8x32xbf16>
    "tpu.trace_start"() <{level = 10 : i32, message = "hqd,hkd->hqk"}> : () -> ()
    %cst_30 = arith.constant dense<0.000000e+00> : vector<4x8x8xf32>
    %70 = tpu.matmul %68, %69, %cst_30 {dimension_numbers = #tpu.dot_dimension_numbers<[2], [2], [1], [1], [0, 0, 0, 1, 1, 1], [0], [0]>} : vector<4x8x32xbf16>, vector<4x8x32xbf16>, vector<4x8x8xf32> -> vector<4x8x8xf32>
    "tpu.trace_stop"() : () -> ()
    %cst_31 = arith.constant 0.176776692 : f32
    %71 = vector.broadcast %cst_31 : f32 to vector<4x8x8xf32>
    %72 = arith.mulf %70, %71 : vector<4x8x8xf32>
    %73 = tpu.iota {dimensions = array<i32: 0>} : vector<8x8xi32>
    %74 = tpu.iota {dimensions = array<i32: 1>} : vector<8x8xi32>
    %75 = arith.cmpi sge, %73, %74 : vector<8x8xi32>
    %76 = vector.shape_cast %75 : vector<8x8xi1> to vector<1x8x8xi1>
    %cst_32 = arith.constant -1.000000e+30 : f32
    %77 = vector.shape_cast %76 : vector<1x8x8xi1> to vector<1x8x8xi1>
    %78 = vector.broadcast %77 : vector<1x8x8xi1> to vector<4x8x8xi1>
    %79 = vector.broadcast %cst_32 : f32 to vector<4x8x8xf32>
    %80 = arith.select %78, %72, %79 : vector<4x8x8xi1>, vector<4x8x8xf32>
    %cst_33 = arith.constant dense<0xFF800000> : vector<4x8xf32>
    %81 = vector.multi_reduction <maximumf>, %80, %cst_33 [2] : vector<4x8x8xf32> to vector<4x8xf32>
    %82 = vector.shape_cast %81 : vector<4x8xf32> to vector<4x8x1xf32>
    %83 = vector.broadcast %82 : vector<4x8x1xf32> to vector<4x8x8xf32>
    %84 = arith.subf %80, %83 : vector<4x8x8xf32>
    %85 = math.exp %84 : vector<4x8x8xf32>
    %cst_34 = arith.constant dense<0.000000e+00> : vector<4x8xf32>
    %86 = vector.multi_reduction <add>, %85, %cst_34 [2] : vector<4x8x8xf32> to vector<4x8xf32>
    %87 = vector.shape_cast %86 : vector<4x8xf32> to vector<4x8x1xf32>
    %88 = tpu.reciprocal %87 {approx = true} : vector<4x8x1xf32> -> vector<4x8x1xf32>
    %89 = vector.broadcast %88 : vector<4x8x1xf32> to vector<4x8x8xf32>
    %90 = arith.mulf %85, %89 : vector<4x8x8xf32>
    %91 = arith.truncf %90 : vector<4x8x8xf32> to vector<4x8x8xbf16>
    %92 = arith.truncf %67 : vector<4x8x32xf32> to vector<4x8x32xbf16>
    "tpu.trace_start"() <{level = 10 : i32, message = "hqk,hkd->hqd"}> : () -> ()
    %cst_35 = arith.constant dense<0.000000e+00> : vector<4x8x32xf32>
    %93 = tpu.matmul %91, %92, %cst_35 {dimension_numbers = #tpu.dot_dimension_numbers<[2], [1], [1], [2], [0, 0, 0, 1, 1, 2], [0], [0]>} : vector<4x8x8xbf16>, vector<4x8x32xbf16>, vector<4x8x32xf32> -> vector<4x8x32xf32>
    "tpu.trace_stop"() : () -> ()
    %94 = arith.truncf %93 : vector<4x8x32xf32> to vector<4x8x32xbf16>
    %c0_36 = arith.constant 0 : index
    %c0_37 = arith.constant 0 : index
    %c0_38 = arith.constant 0 : index
    %c0_39 = arith.constant 0 : index
    %95 = vector.load %arg9[%c0_36, %c0_37, %c0_38, %c0_39] : memref<1x4x32x128xbf16, #tpu.memory_space<vmem>>, vector<1x4x32x128xbf16>
    %96 = vector.shape_cast %95 : vector<1x4x32x128xbf16> to vector<4x32x128xbf16>
    "tpu.trace_start"() <{level = 10 : i32, message = "hsd,hdc->hsc"}> : () -> ()
    %cst_40 = arith.constant dense<0.000000e+00> : vector<4x8x128xf32>
    %97 = tpu.matmul %94, %96, %cst_40 {dimension_numbers = #tpu.dot_dimension_numbers<[2], [1], [1], [2], [0, 0, 0, 1, 1, 2], [0], [0]>} : vector<4x8x32xbf16>, vector<4x32x128xbf16>, vector<4x8x128xf32> -> vector<4x8x128xf32>
    "tpu.trace_stop"() : () -> ()
    %cst_41 = arith.constant dense<0.000000e+00> : vector<8x128xf32>
    %98 = vector.multi_reduction <add>, %97, %cst_41 [0] : vector<4x8x128xf32> to vector<8x128xf32>
    %99 = arith.addf %98, %5 : vector<8x128xf32>
    %c0_42 = arith.constant 0 : index
    %c0_43 = arith.constant 0 : index
    %c0_44 = arith.constant 0 : index
    %100 = vector.load %arg5[%c0_42, %c0_43, %c0_44] : memref<1x1x128xf32, #tpu.memory_space<vmem>>, vector<1x1x128xf32>
    %101 = vector.shape_cast %100 : vector<1x1x128xf32> to vector<1x128xf32>
    %102 = arith.mulf %99, %99 : vector<8x128xf32>
    %cst_45 = arith.constant dense<0.000000e+00> : vector<8xf32>
    %103 = vector.multi_reduction <add>, %102, %cst_45 [1] : vector<8x128xf32> to vector<8xf32>
    %104 = vector.shape_cast %103 : vector<8xf32> to vector<8x1xf32>
    %cst_46 = arith.constant 1.280000e+02 : f32
    %105 = vector.broadcast %cst_46 : f32 to vector<8x1xf32>
    %106 = arith.divf %104, %105 : vector<8x1xf32>
    %cst_47 = arith.constant 9.99999974E-6 : f32
    %107 = vector.broadcast %cst_47 : f32 to vector<8x1xf32>
    %108 = arith.addf %106, %107 : vector<8x1xf32>
    %109 = math.rsqrt %108 : vector<8x1xf32>
    %110 = vector.broadcast %109 : vector<8x1xf32> to vector<8x128xf32>
    %111 = arith.mulf %99, %110 : vector<8x128xf32>
    %112 = vector.broadcast %101 : vector<1x128xf32> to vector<8x128xf32>
    %113 = arith.mulf %111, %112 : vector<8x128xf32>
    %114 = arith.truncf %113 : vector<8x128xf32> to vector<8x128xbf16>
    %c0_48 = arith.constant 0 : index
    %c0_49 = arith.constant 0 : index
    %c0_50 = arith.constant 0 : index
    %115 = vector.load %arg10[%c0_48, %c0_49, %c0_50] : memref<1x128x512xbf16, #tpu.memory_space<vmem>>, vector<1x128x512xbf16>
    %116 = vector.shape_cast %115 : vector<1x128x512xbf16> to vector<128x512xbf16>
    %cst_51 = arith.constant dense<0.000000e+00> : vector<8x512xf32>
    %117 = tpu.matmul %114, %116, %cst_51 {dimension_numbers = #tpu.dot_dimension_numbers<[1], [0], [0], [1], [0, 0, 1, 1], [], []>} : vector<8x128xbf16>, vector<128x512xbf16>, vector<8x512xf32> -> vector<8x512xf32>
    %118 = vector.extract_strided_slice %117 {offsets = [0, 0], sizes = [8, 256], strides = [1, 1]} : vector<8x512xf32> to vector<8x256xf32>
    %119 = vector.extract_strided_slice %117 {offsets = [0, 256], sizes = [8, 256], strides = [1, 1]} : vector<8x512xf32> to vector<8x256xf32>
    %120 = arith.negf %118 : vector<8x256xf32>
    %121 = math.exp %120 : vector<8x256xf32>
    %cst_52 = arith.constant 1.000000e+00 : f32
    %122 = vector.broadcast %cst_52 : f32 to vector<8x256xf32>
    %123 = arith.addf %122, %121 : vector<8x256xf32>
    %124 = arith.divf %122, %123 : vector<8x256xf32>
    %125 = arith.mulf %118, %124 : vector<8x256xf32>
    %126 = arith.mulf %125, %119 : vector<8x256xf32>
    %127 = arith.truncf %126 : vector<8x256xf32> to vector<8x256xbf16>
    %c0_53 = arith.constant 0 : index
    %c0_54 = arith.constant 0 : index
    %c0_55 = arith.constant 0 : index
    %128 = vector.load %arg11[%c0_53, %c0_54, %c0_55] : memref<1x256x128xbf16, #tpu.memory_space<vmem>>, vector<1x256x128xbf16>
    %129 = vector.shape_cast %128 : vector<1x256x128xbf16> to vector<256x128xbf16>
    %cst_56 = arith.constant dense<0.000000e+00> : vector<8x128xf32>
    %130 = tpu.matmul %127, %129, %cst_56 {dimension_numbers = #tpu.dot_dimension_numbers<[1], [0], [0], [1], [0, 0, 1, 1], [], []>} : vector<8x256xbf16>, vector<256x128xbf16>, vector<8x128xf32> -> vector<8x128xf32>
    %c0_57 = arith.constant 0 : index
    %c0_58 = arith.constant 0 : index
    %131 = vector.load %arg14[%c0_57, %c0_58] : memref<8x128xf32, #tpu.memory_space<vmem>>, vector<8x128xf32>
    tpu.vector_store %arg14[%c0_57, %c0_58], %130 {strides = array<i32>} : memref<8x128xf32, #tpu.memory_space<vmem>>, vector<8x128xf32>,
    %c0_59 = arith.constant 0 : index
    %c0_60 = arith.constant 0 : index
    %132 = vector.load %arg15[%c0_59, %c0_60] : memref<8x128xf32, #tpu.memory_space<vmem>>, vector<8x128xf32>
    tpu.vector_store %arg15[%c0_59, %c0_60], %99 {strides = array<i32>} : memref<8x128xf32, #tpu.memory_space<vmem>>, vector<8x128xf32>,
    %c1_i32 = arith.constant 1 : i32
    %133 = arith.cmpi eq, %arg0, %c1_i32 : i32
    %134 = arith.extui %133 : i1 to i32
    %c0_i32_61 = arith.constant 0 : i32
    %135 = arith.cmpi ne, %134, %c0_i32_61 : i32
    scf.if %135 {
      %136 = arith.addf %130, %99 : vector<8x128xf32>
      %c0_62 = arith.constant 0 : index
      %c0_63 = arith.constant 0 : index
      %137 = vector.load %arg12[%c0_62, %c0_63] : memref<1x128xf32, #tpu.memory_space<vmem>>, vector<1x128xf32>
      %138 = arith.mulf %136, %136 : vector<8x128xf32>
      %cst_64 = arith.constant dense<0.000000e+00> : vector<8xf32>
      %139 = vector.multi_reduction <add>, %138, %cst_64 [1] : vector<8x128xf32> to vector<8xf32>
      %140 = vector.shape_cast %139 : vector<8xf32> to vector<8x1xf32>
      %cst_65 = arith.constant 1.280000e+02 : f32
      %141 = vector.broadcast %cst_65 : f32 to vector<8x1xf32>
      %142 = arith.divf %140, %141 : vector<8x1xf32>
      %cst_66 = arith.constant 9.99999974E-6 : f32
      %143 = vector.broadcast %cst_66 : f32 to vector<8x1xf32>
      %144 = arith.addf %142, %143 : vector<8x1xf32>
      %145 = math.rsqrt %144 : vector<8x1xf32>
      %146 = vector.broadcast %145 : vector<8x1xf32> to vector<8x128xf32>
      %147 = arith.mulf %136, %146 : vector<8x128xf32>
      %148 = vector.broadcast %137 : vector<1x128xf32> to vector<8x128xf32>
      %149 = arith.mulf %147, %148 : vector<8x128xf32>
      %c0_67 = arith.constant 0 : index
      %c0_68 = arith.constant 0 : index
      %150 = vector.load %arg13[%c0_67, %c0_68] : memref<8x128xf32, #tpu.memory_space<vmem>>, vector<8x128xf32>
      tpu.vector_store %arg13[%c0_67, %c0_68], %149 {strides = array<i32>} : memref<8x128xf32, #tpu.memory_space<vmem>>, vector<8x128xf32>,
    } else {
    }
    return
  }
  func.func @transform_0(%arg0: i32) -> (i32, i32) {
    %c0_i32 = arith.constant 0 : i32
    %c0_i32_0 = arith.constant 0 : i32
    %c0_i32_1 = arith.constant 0 : i32
    return %c0_i32, %c0_i32_0 : i32, i32
  }
  func.func @transform_1(%arg0: i32) -> (i32, i32) {
    %c0_i32 = arith.constant 0 : i32
    %c0_i32_0 = arith.constant 0 : i32
    %c0_i32_1 = arith.constant 0 : i32
    return %c0_i32, %c0_i32_0 : i32, i32
  }
  func.func @transform_2(%arg0: i32) -> (i32, i32) {
    %c0_i32 = arith.constant 0 : i32
    %c0_i32_0 = arith.constant 0 : i32
    %c0_i32_1 = arith.constant 0 : i32
    return %c0_i32, %c0_i32_0 : i32, i32
  }
  func.func @transform_3(%arg0: i32) -> (i32, i32, i32) {
    %c0_i32 = arith.constant 0 : i32
    %c0_i32_0 = arith.constant 0 : i32
    %c0_i32_1 = arith.constant 0 : i32
    return %arg0, %c0_i32, %c0_i32_0 : i32, i32, i32
  }
  func.func @transform_4(%arg0: i32) -> (i32, i32, i32) {
    %c0_i32 = arith.constant 0 : i32
    %c0_i32_0 = arith.constant 0 : i32
    %c0_i32_1 = arith.constant 0 : i32
    return %arg0, %c0_i32, %c0_i32_0 : i32, i32, i32
  }
  func.func @transform_5(%arg0: i32) -> (i32, i32, i32, i32) {
    %c0_i32 = arith.constant 0 : i32
    %c0_i32_0 = arith.constant 0 : i32
    %c0_i32_1 = arith.constant 0 : i32
    %c0_i32_2 = arith.constant 0 : i32
    return %arg0, %c0_i32, %c0_i32_0, %c0_i32_1 : i32, i32, i32, i32
  }
  func.func @transform_6(%arg0: i32) -> (i32, i32, i32, i32) {
    %c0_i32 = arith.constant 0 : i32
    %c0_i32_0 = arith.constant 0 : i32
    %c0_i32_1 = arith.constant 0 : i32
    %c0_i32_2 = arith.constant 0 : i32
    return %arg0, %c0_i32, %c0_i32_0, %c0_i32_1 : i32, i32, i32, i32
  }
  func.func @transform_7(%arg0: i32) -> (i32, i32, i32, i32) {
    %c0_i32 = arith.constant 0 : i32
    %c0_i32_0 = arith.constant 0 : i32
    %c0_i32_1 = arith.constant 0 : i32
    %c0_i32_2 = arith.constant 0 : i32
    return %arg0, %c0_i32, %c0_i32_0, %c0_i32_1 : i32, i32, i32, i32
  }
  func.func @transform_8(%arg0: i32) -> (i32, i32, i32, i32) {
    %c0_i32 = arith.constant 0 : i32
    %c0_i32_0 = arith.constant 0 : i32
    %c0_i32_1 = arith.constant 0 : i32
    %c0_i32_2 = arith.constant 0 : i32
    return %arg0, %c0_i32, %c0_i32_0, %c0_i32_1 : i32, i32, i32, i32
  }
  func.func @transform_9(%arg0: i32) -> (i32, i32, i32) {
    %c0_i32 = arith.constant 0 : i32
    %c0_i32_0 = arith.constant 0 : i32
    %c0_i32_1 = arith.constant 0 : i32
    return %arg0, %c0_i32, %c0_i32_0 : i32, i32, i32
  }
  func.func @transform_10(%arg0: i32) -> (i32, i32, i32) {
    %c0_i32 = arith.constant 0 : i32
    %c0_i32_0 = arith.constant 0 : i32
    %c0_i32_1 = arith.constant 0 : i32
    return %arg0, %c0_i32, %c0_i32_0 : i32, i32, i32
  }
  func.func @transform_11(%arg0: i32) -> (i32, i32) {
    %c0_i32 = arith.constant 0 : i32
    %c0_i32_0 = arith.constant 0 : i32
    %c0_i32_1 = arith.constant 0 : i32
    return %c0_i32, %c0_i32_0 : i32, i32
  }
  func.func @transform_12(%arg0: i32) -> (i32, i32) {
    %c0_i32 = arith.constant 0 : i32
    %c0_i32_0 = arith.constant 0 : i32
    %c0_i32_1 = arith.constant 0 : i32
    return %c0_i32, %c0_i32_0 : i32, i32
  }
}

</mosaic_0001>

<bundles_post_ra>
// kernel: llama_forward.1
= control target key start
LH: loop header
LB: loop body
LE: loop exit
PB: predicated region body
PF: predicated region fallthrough
CT: control target
= control target key end

     0   :  { %s4010_s0 = inlined_call_operand.vmem [shape: f32[8,128], index: 0, kind: input, shape index: {}]   ;;  %s4011_s1 = inlined_call_operand.vmem [shape: f32[8,32], index: 1, kind: input, shape index: {}]   ;;  %s4012_s2 = inlined_call_operand.vmem [shape: f32[8,32], index: 2, kind: input, shape index: {}]   ;;  %s4013_s3 = inlined_call_operand.vmem [shape: f32[2,1,128], index: 3, kind: input, shape index: {}]   ;;  %s4014_s4 = inlined_call_operand.vmem [shape: f32[2,1,128], index: 4, kind: input, shape index: {}]   ;;  %s4015_s5 = inlined_call_operand.vmem [shape: bf16[2,4,128,32], index: 5, kind: input, shape index: {}]   ;;  %s4016_s6 = inlined_call_operand.vmem [shape: bf16[2,2,128,32], index: 6, kind: input, shape index: {}]   ;;  %s4017_s7 = inlined_call_operand.vmem [shape: bf16[2,2,128,32], index: 7, kind: input, shape index: {}]   ;;  %s4018_s8 = inlined_call_operand.vmem [shape: bf16[2,4,32,128], index: 8, kind: input, shape index: {}]   ;;  %s4019_s9 = inlined_call_operand.vmem [shape: bf16[2,128,512], index: 9, kind: input, shape index: {}]   ;;  %s4020_s10 = inlined_call_operand.vmem [shape: bf16[2,256,128], index: 10, kind: input, shape index: {}]   ;;  %s4021_s11 = inlined_call_operand.vmem [shape: f32[1,128], index: 11, kind: input, shape index: {}]   ;;  %s4022_s12 = inlined_call_operand.hbm [shape: f32[8,128], index: 12, kind: output, shape index: {}]  }
   0x1   :  { %4024 = sst [smem:[#allocation8_spill]] %s4015_s5 }
   0x2   :  { %17 = vsyncpa [#allocation5], 0  ;;  %s3588_s21 = smov 0  }
   0x3 LB: > { %4025 = sst [smem:[#allocation7_spill]] %s3514_s21  ;;  %s3594_s22 = sadd.s32 4294967295, %s3514_s21   ;;  %s3514_s21 = sphi %s3588_s21, %s23_s21  }
   0x4   : > { %p2769_p0 = scmp.ge.s32.totalorder %s3514_s21, 1  ;;  %p424_p1 = scmp.lt.s32.totalorder %s3514_s21, 3 }
   0x6   : > { %p425_p2 = pnand %p2769_p0, %p424_p1 }
   0x7   : > { %p492_p3 = scmp.lt.s32.totalorder (!%p425_p2), %s3594_s22, 1  ;;  %s4026_s5 = sld [smem:[#allocation8_spill]] (!%p425_p2) }
   0x8   : > { %428 = sbr.rel (%p425_p2) target bundleno = 2297 (0x8f9), region = 68  ;;  %p2782_p4 = scmp.ne.s32.totalorder (!%p425_p2), %s3594_s22, 0 }
   0xd   : > { %s3600_s23 = scalar_select %p492_p3, %s3594_s22, 1 }
   0xf   : > { %s2925_s30 = sshll.u32 %s3600_s23, 8  ;;  %s2926_s13 = sshll.u32 %s3600_s23, 7 }
  0x10   : > { %s3615_s16 = scalar_lea.vmem %s4026_s5, %s2925_s30  ;;  %s3620_s19 = scalar_lea.vmem %s4016_s6, %s2926_s13 }
  0x11   : > { %s3625_s25 = scalar_lea.vmem %s4017_s7, %s2926_s13  ;;  %s2928_s26 = sshll.u32 %s3600_s23, 6 }
  0x12   : > { %s3631_s29 = scalar_lea.vmem %s4018_s8, %s2928_s26  ;;  %s3636_s15 = scalar_lea.vmem %s4019_s9, %s2925_s30 }
  0x13   : > { %s3641_s18 = scalar_lea.vmem %s4020_s10, %s2926_s13  ;;  %532 = sbr.rel (%p2782_p4) target bundleno = 26 (0x1a), region = 72 }
  0x18   : > { %v533_v0 = vld [vmem:[%s4010_s0] sm:$0xff]  ;;  %v3516_v1 = vmov 0.0  }
  0x19   : > { %534 = vst [vmem:[#allocation2] sm:$0xff] %v533_v0  ;;  %535 = vst [vmem:[#allocation3] sm:$0xff] %v3516_v1 }
  0x1a PF: > { %v3517_v5 = vmov 0.0   ;;  %v3314_v6 = vld [vmem:[%s3615_s16 + $0x38] sm:$0xff]   ;;  %v3316_v9 = vld [vmem:[%s3615_s16 + $0x30] sm:$0xff]   ;;  %v3318_v11 = vld [vmem:[%s3615_s16 + $0x28] sm:$0xff]   ;;  %vm3518_vm0 = vmmov 0   ;;  %s4027_s26 = scalar_lea.vmem %s4013_s3, %s3600_s23  ;;  %s3519_s30 = smov 16  }
  0x1b   : > { %3053 = vmatprep.subr.bf16.mxu0 %v3517_v5  ;;  %3073 = vmatprep.subr.bf16.mxu1 %v3517_v5  ;;  %v3315_v7 = vld [vmem:[%s3615_s16 + $0x78] sm:$0xff]   ;;  %v3317_v10 = vld [vmem:[%s3615_s16 + $0x70] sm:$0xff]   ;;  %v3319_v12 = vld [vmem:[%s3615_s16 + $0x68] sm:$0xff]   ;;  %s3520_s13 = smov 112   ;;  %vm1723_vm1 = vcmask 1043456   ;;  %vm1426_vm2 = vcmask 130048   ;;  %s4028_s14 = scalar_lea.vmem %s4014_s4, %s3600_s23 }
  0x1c   : > { %3054 = vmatpush3.bf16.msra.mxu0 %v3314_v6  ;;  %3074 = vmatpush3.bf16.msra.mxu1 %v3315_v7  ;;  %v3320_v13 = vld [vmem:[%s3615_s16 + $0x20] sm:$0xff]   ;;  %v3322_v15 = vld [vmem:[%s3615_s16 + $0x18] sm:$0xff]   ;;  %v3324_v17 = vld [vmem:[%s3615_s16 + $0x10] sm:$0xff]   ;;  %vm1475_vm3 = vcmask 261120   ;;  %vm1669_vm5 = vcmask 64512   ;;  %p2919_p5 = scmp.ne.s32.totalorder %s3594_s22, 1 }
  0x1d   : > { %3055 = vmatprep.subr.bf16.mxu0 %v3517_v5  ;;  %3075 = vmatprep.subr.bf16.mxu1 %v3517_v5  ;;  %v3321_v14 = vld [vmem:[%s3615_s16 + $0x60] sm:$0xff]   ;;  %v3323_v16 = vld [vmem:[%s3615_s16 + $0x58] sm:$0xff]   ;;  %v3325_v18 = vld [vmem:[%s3615_s16 + $0x50] sm:$0xff]  }
  0x1e   : > { %v3326_v19 = vld [vmem:[%s3615_s16 + $0x8] sm:$0xff]   ;;  %v3328_v21 = vld [vmem:[%s3615_s16] sm:$0xff]   ;;  %3069 = vmatprep.mubr.msk.bf16.mxu0 %vm3518_vm0, %v3517_v5  ;;  %3089 = vmatprep.mubr.msk.bf16.mxu1 %vm3518_vm0, %v3517_v5  ;;  %v3330_v30 = vld [vmem:[%s3615_s16 + $0xb8] sm:$0xff]  }
  0x1f   : > { %v3327_v20 = vld [vmem:[%s3615_s16 + $0x48] sm:$0xff]   ;;  %v3329_v22 = vld [vmem:[%s3615_s16 + $0x40] sm:$0xff]   ;;  %v3331_v31 = vld [vmem:[%s3615_s16 + $0xf8] sm:$0xff]  }
  0x20   : > { %v536_v2 = vld [vmem:[#allocation2] sm:$0xff]  ;;  %v537_v3 = vld [vmem:[#allocation3] sm:$0xff]  ;;  %3056 = vmatpush3.bf16.msra.mxu0 %v3316_v9  ;;  %3076 = vmatpush3.bf16.msra.mxu1 %v3317_v10  ;;  %v3332_v33 = vld [vmem:[%s3615_s16 + $0xb0] sm:$0xff]  }
  0x21   : > { %v3647_v4 = vadd.f32 %v537_v3, %v536_v2  ;;  %3057 = vmatprep.subr.bf16.mxu0 %v3517_v5  ;;  %3077 = vmatprep.subr.bf16.mxu1 %v3517_v5  ;;  %v2783_v27 = vld [vmem:[%s4027_s26] ss:$0 sm:$0xff]  ;;  %v3333_v34 = vld [vmem:[%s3615_s16 + $0xf0] sm:$0xff]   ;;  %v3334_v35 = vld [vmem:[%s3615_s16 + $0xa8] sm:$0xff]  }
  0x22   : > { %v3335_v36 = vld [vmem:[%s3615_s16 + $0xe8] sm:$0xff]   ;;  %v3336_v37 = vld [vmem:[%s3615_s16 + $0xa0] sm:$0xff]   ;;  %v3338_v39 = vld [vmem:[%s3615_s16 + $0x98] sm:$0xff]  }
  0x23   : > { %v540_v8 = vmul.f32 %v3647_v4, %v3647_v4  ;;  %v3337_v38 = vld [vmem:[%s3615_s16 + $0xe0] sm:$0xff]   ;;  %v3339_v40 = vld [vmem:[%s3615_s16 + $0xd8] sm:$0xff]   ;;  %v3340_v41 = vld [vmem:[%s3615_s16 + $0x90] sm:$0xff]  }
  0x24   : > { %3058 = vmatpush3.bf16.msra.mxu0 %v3318_v11  ;;  %3078 = vmatpush3.bf16.msra.mxu1 %v3319_v12  ;;  %v3341_v42 = vld [vmem:[%s3615_s16 + $0xd0] sm:$0xff]   ;;  %v3342_v43 = vld [vmem:[%s3615_s16 + $0x88] sm:$0xff]   ;;  %v3344_v45 = vld [vmem:[%s3615_s16 + $0x80] sm:$0xff]  }
  0x25   : > { %541 = vadd.xlane.f32.xlu0 %v540_v8  ;;  %3059 = vmatprep.subr.bf16.mxu0 %v3517_v5  ;;  %v3343_v44 = vld [vmem:[%s3615_s16 + $0xc8] sm:$0xff]   ;;  %v3345_v46 = vld [vmem:[%s3615_s16 + $0xc0] sm:$0xff]   ;;  %v3346_v47 = vld [vmem:[%s3620_s19 + $0x38] sm:$0xff]  }
  0x26   : > { %3079 = vmatprep.subr.bf16.mxu1 %v3517_v5  ;;  %v3347_v48 = vld [vmem:[%s3620_s19 + $0x78] sm:$0xff]   ;;  %v3348_v49 = vld [vmem:[%s3620_s19 + $0x30] sm:$0xff]   ;;  %v3350_v51 = vld [vmem:[%s3620_s19 + $0x28] sm:$0xff]  }
  0x27   : > { %v3349_v50 = vld [vmem:[%s3620_s19 + $0x70] sm:$0xff]   ;;  %v3351_v52 = vld [vmem:[%s3620_s19 + $0x68] sm:$0xff]   ;;  %v3352_v53 = vld [vmem:[%s3620_s19 + $0x20] sm:$0xff]  }
  0x28   : > { %3060 = vmatpush3.bf16.msra.mxu0 %v3320_v13  ;;  %3080 = vmatpush3.bf16.msra.mxu1 %v3321_v14  ;;  %v3353_v54 = vld [vmem:[%s3620_s19 + $0x60] sm:$0xff]   ;;  %v3354_v55 = vld [vmem:[%s3620_s19 + $0x18] sm:$0xff]   ;;  %v3356_v57 = vld [vmem:[%s3620_s19 + $0x10] sm:$0xff]  }
  0x29   : > { %3061 = vmatprep.subr.bf16.mxu0 %v3517_v5  ;;  %3081 = vmatprep.subr.bf16.mxu1 %v3517_v5  ;;  %v3355_v56 = vld [vmem:[%s3620_s19 + $0x58] sm:$0xff]   ;;  %v3357_v58 = vld [vmem:[%s3620_s19 + $0x50] sm:$0xff]   ;;  %v3358_v59 = vld [vmem:[%s3620_s19 + $0x8] sm:$0xff]  }
  0x2a   : > { %v3359_v60 = vld [vmem:[%s3620_s19 + $0x48] sm:$0xff]   ;;  %v3360_v61 = vld [vmem:[%s3620_s19] sm:$0xff]   ;;  %v3362_v63 = vld [vmem:[%s3625_s25 + $0x38] sm:$0xff]  }
  0x2b   : > { %v3361_v62 = vld [vmem:[%s3620_s19 + $0x40] sm:$0xff]   ;;  %v3363_v0 = vld [vmem:[%s3625_s25 + $0x78] sm:$0xff]   ;;  %v3364_v1 = vld [vmem:[%s3625_s25 + $0x30] sm:$0xff]  }
  0x2c   : > { %3062 = vmatpush3.bf16.msra.mxu0 %v3322_v15  ;;  %3082 = vmatpush3.bf16.msra.mxu1 %v3323_v16  ;;  %v3365_v2 = vld [vmem:[%s3625_s25 + $0x70] sm:$0xff]   ;;  %v3366_v3 = vld [vmem:[%s3625_s25 + $0x28] sm:$0xff]   ;;  %v3368_v7 = vld [vmem:[%s3625_s25 + $0x20] sm:$0xff]  }
  0x2d   : > { %3063 = vmatprep.subr.bf16.mxu0 %v3517_v5  ;;  %3083 = vmatprep.subr.bf16.mxu1 %v3517_v5  ;;  %v3367_v6 = vld [vmem:[%s3625_s25 + $0x68] sm:$0xff]   ;;  %v3369_v8 = vld [vmem:[%s3625_s25 + $0x60] sm:$0xff]   ;;  %v3370_v9 = vld [vmem:[%s3625_s25 + $0x18] sm:$0xff]  }
  0x2e   : > { %v3371_v10 = vld [vmem:[%s3625_s25 + $0x58] sm:$0xff]   ;;  %v3372_v11 = vld [vmem:[%s3625_s25 + $0x10] sm:$0xff]   ;;  %v3374_v13 = vld [vmem:[%s3625_s25 + $0x8] sm:$0xff]  }
  0x2f   : > { %v3373_v12 = vld [vmem:[%s3625_s25 + $0x50] sm:$0xff]   ;;  %v3375_v14 = vld [vmem:[%s3625_s25 + $0x48] sm:$0xff]   ;;  %v3376_v15 = vld [vmem:[%s3625_s25] sm:$0xff]  }
  0x30   : > { %3064 = vmatpush3.bf16.msra.mxu0 %v3324_v17  ;;  %3084 = vmatpush3.bf16.msra.mxu1 %v3325_v18  ;;  %v3377_v16 = vld [vmem:[%s3625_s25 + $0x40] sm:$0xff]  }
  0x31   : > { %3065 = vmatprep.subr.bf16.mxu0 %v3517_v5  ;;  %3085 = vmatprep.subr.bf16.mxu1 %v3517_v5 }
  0x34   : > { %3066 = vmatpush3.bf16.msra.mxu0 %v3326_v19  ;;  %3086 = vmatpush3.bf16.msra.mxu1 %v3327_v20 }
  0x35   : > { %3067 = vmatprep.subr.bf16.mxu0 %v3517_v5  ;;  %3087 = vmatprep.subr.bf16.mxu1 %v3517_v5 }
  0x38   : > { %3068 = vmatpush3.bf16.msra.mxu0 %v3328_v21  ;;  %3088 = vmatpush3.bf16.msra.mxu1 %v3329_v22 }
  0x39   : > { %3093 = vmatprep.subr.bf16.mxu0 %v3517_v5  ;;  %3113 = vmatprep.subr.bf16.mxu1 %v3517_v5 }
  0xae   : > { %v542_v23 = vpop.xlane.xlu0 %541 }
  0xaf   : > { %v544_v24 = vmul.f32 0.0078125, %v542_v23 }
  0xb1   : > { %v545_v25 = vadd.f32 1e-05, %v544_v24 }
  0xb3   : > { %3450 = vrsqrt.f32 %v545_v25 }
  0xc0   : > { %v3451_v26 = vpop.eup %3450 }
  0xc1   : > { %v547_v28 = vmul.f32 %v3451_v26, %v3647_v4 }
  0xc3   : > { %v554_v29 = vmul.f32 %v2783_v27, %v547_v28 }
  0xc5   : > { %v3697_v32 = vpack.c.bf16 %v554_v29, %v554_v29 }
  0xc7   : > { %3070 = vmatmul.mubr.bf16.vlgmr.msra.gmra.mxu0 %v3697_v32  ;;  %3090 = vmatmul.mubr.bf16.vlgmr.msra.gmra.mxu1 %v3697_v32 }
  0xc8   : > { %3094 = vmatpush3.bf16.msra.mxu0 %v3330_v30  ;;  %3114 = vmatpush3.bf16.msra.mxu1 %v3331_v31 }
  0xc9   : > { %3095 = vmatprep.subr.bf16.mxu0 %v3517_v5  ;;  %3115 = vmatprep.subr.bf16.mxu1 %v3517_v5 }
  0xca   : > { %3109 = vmatprep.mubr.msk.bf16.mxu0 %vm3518_vm0, %v3517_v5  ;;  %3129 = vmatprep.mubr.msk.bf16.mxu1 %vm3518_vm0, %v3517_v5 }
  0xcc   : > { %3096 = vmatpush3.bf16.msra.mxu0 %v3332_v33  ;;  %3116 = vmatpush3.bf16.msra.mxu1 %v3333_v34 }
  0xcd   : > { %3097 = vmatprep.subr.bf16.mxu0 %v3517_v5  ;;  %3117 = vmatprep.subr.bf16.mxu1 %v3517_v5 }
  0xd0   : > { %3098 = vmatpush3.bf16.msra.mxu0 %v3334_v35  ;;  %3118 = vmatpush3.bf16.msra.mxu1 %v3335_v36 }
  0xd1   : > { %3099 = vmatprep.subr.bf16.mxu0 %v3517_v5  ;;  %3119 = vmatprep.subr.bf16.mxu1 %v3517_v5 }
  0xd4   : > { %3100 = vmatpush3.bf16.msra.mxu0 %v3336_v37  ;;  %3120 = vmatpush3.bf16.msra.mxu1 %v3337_v38 }
  0xd5   : > { %3101 = vmatprep.subr.bf16.mxu0 %v3517_v5  ;;  %3121 = vmatprep.subr.bf16.mxu1 %v3517_v5 }
  0xd8   : > { %3102 = vmatpush3.bf16.msra.mxu0 %v3338_v39  ;;  %3122 = vmatpush3.bf16.msra.mxu1 %v3339_v40 }
  0xd9   : > { %3103 = vmatprep.subr.bf16.mxu0 %v3517_v5  ;;  %3123 = vmatprep.subr.bf16.mxu1 %v3517_v5 }
  0xdc   : > { %3104 = vmatpush3.bf16.msra.mxu0 %v3340_v41  ;;  %3124 = vmatpush3.bf16.msra.mxu1 %v3341_v42 }
  0xdd   : > { %3105 = vmatprep.subr.bf16.mxu0 %v3517_v5  ;;  %3125 = vmatprep.subr.bf16.mxu1 %v3517_v5 }
  0xe0   : > { %3106 = vmatpush3.bf16.msra.mxu0 %v3342_v43  ;;  %3126 = vmatpush3.bf16.msra.mxu1 %v3343_v44 }
  0xe1   : > { %3107 = vmatprep.subr.bf16.mxu0 %v3517_v5  ;;  %3127 = vmatprep.subr.bf16.mxu1 %v3517_v5 }
  0xe4   : > { %3108 = vmatpush3.bf16.msra.mxu0 %v3344_v45  ;;  %3128 = vmatpush3.bf16.msra.mxu1 %v3345_v46 }
  0xe5   : > { %3133 = vmatprep.subr.bf16.mxu0 %v3517_v5  ;;  %3153 = vmatprep.subr.bf16.mxu1 %v3517_v5 }
  0xe7   : > { %3110 = vmatmul.mubr.bf16.vlgmr.msra.gmra.mxu0 %v3697_v32  ;;  %3130 = vmatmul.mubr.bf16.vlgmr.msra.gmra.mxu1 %v3697_v32 }
  0xe8   : > { %3134 = vmatpush3.bf16.msra.mxu0 %v3346_v47  ;;  %3154 = vmatpush3.bf16.msra.mxu1 %v3347_v48 }
  0xe9   : > { %3135 = vmatprep.subr.bf16.mxu0 %v3517_v5  ;;  %3155 = vmatprep.subr.bf16.mxu1 %v3517_v5 }
  0xea   : > { %3149 = vmatprep.mubr.msk.bf16.mxu0 %vm3518_vm0, %v3517_v5  ;;  %3169 = vmatprep.mubr.msk.bf16.mxu1 %vm3518_vm0, %v3517_v5 }
  0xec   : > { %3136 = vmatpush3.bf16.msra.mxu0 %v3348_v49  ;;  %3156 = vmatpush3.bf16.msra.mxu1 %v3349_v50 }
  0xed   : > { %3137 = vmatprep.subr.bf16.mxu0 %v3517_v5  ;;  %3157 = vmatprep.subr.bf16.mxu1 %v3517_v5 }
  0xf0   : > { %3138 = vmatpush3.bf16.msra.mxu0 %v3350_v51  ;;  %3158 = vmatpush3.bf16.msra.mxu1 %v3351_v52 }
  0xf1   : > { %3139 = vmatprep.subr.bf16.mxu0 %v3517_v5  ;;  %3159 = vmatprep.subr.bf16.mxu1 %v3517_v5 }
  0xf4   : > { %3140 = vmatpush3.bf16.msra.mxu0 %v3352_v53  ;;  %3160 = vmatpush3.bf16.msra.mxu1 %v3353_v54 }
  0xf5   : > { %3141 = vmatprep.subr.bf16.mxu0 %v3517_v5  ;;  %3161 = vmatprep.subr.bf16.mxu1 %v3517_v5 }
  0xf8   : > { %3142 = vmatpush3.bf16.msra.mxu0 %v3354_v55  ;;  %3162 = vmatpush3.bf16.msra.mxu1 %v3355_v56 }
  0xf9   : > { %3143 = vmatprep.subr.bf16.mxu0 %v3517_v5  ;;  %3163 = vmatprep.subr.bf16.mxu1 %v3517_v5 }
  0xfc   : > { %3144 = vmatpush3.bf16.msra.mxu0 %v3356_v57  ;;  %3164 = vmatpush3.bf16.msra.mxu1 %v3357_v58 }
  0xfd   : > { %3145 = vmatprep.subr.bf16.mxu0 %v3517_v5  ;;  %3165 = vmatprep.subr.bf16.mxu1 %v3517_v5 }
 0x100   : > { %3146 = vmatpush3.bf16.msra.mxu0 %v3358_v59  ;;  %3166 = vmatpush3.bf16.msra.mxu1 %v3359_v60  ;;  %v1389_v60 = vld [vmem:[%s4012_s2] sm:$0xff] }
 0x101   : > { %3147 = vmatprep.subr.bf16.mxu0 %v3517_v5  ;;  %3167 = vmatprep.subr.bf16.mxu1 %v3517_v5 }
 0x104   : > { %3148 = vmatpush3.bf16.msra.mxu0 %v3360_v61  ;;  %3168 = vmatpush3.bf16.msra.mxu1 %v3361_v62  ;;  %v1388_v62 = vld [vmem:[%s4011_s1] sm:$0xff] }
 0x105   : > { %3173 = vmatprep.subr.bf16.mxu0 %v3517_v5  ;;  %3193 = vmatprep.subr.bf16.mxu1 %v3517_v5 }
 0x107   : > { %3150 = vmatmul.mubr.bf16.vlgmr.msra.gmra.mxu0 %v3697_v32  ;;  %3170 = vmatmul.mubr.bf16.vlgmr.msra.gmra.mxu1 %v3697_v32 }
 0x108   : > { %3174 = vmatpush3.bf16.msra.mxu0 %v3362_v63  ;;  %3194 = vmatpush3.bf16.msra.mxu1 %v3363_v0 }
 0x109   : > { %3175 = vmatprep.subr.bf16.mxu0 %v3517_v5  ;;  %3195 = vmatprep.subr.bf16.mxu1 %v3517_v5 }
 0x10a   : > { %3189 = vmatprep.mubr.msk.bf16.mxu0 %vm3518_vm0, %v3517_v5  ;;  %3209 = vmatprep.mubr.msk.bf16.mxu1 %vm3518_vm0, %v3517_v5 }
 0x10c   : > { %3176 = vmatpush3.bf16.msra.mxu0 %v3364_v1  ;;  %3196 = vmatpush3.bf16.msra.mxu1 %v3365_v2 }
 0x10d   : > { %3177 = vmatprep.subr.bf16.mxu0 %v3517_v5  ;;  %3197 = vmatprep.subr.bf16.mxu1 %v3517_v5 }
 0x110   : > { %3178 = vmatpush3.bf16.msra.mxu0 %v3366_v3  ;;  %3198 = vmatpush3.bf16.msra.mxu1 %v3367_v6 }
 0x111   : > { %3179 = vmatprep.subr.bf16.mxu0 %v3517_v5  ;;  %3199 = vmatprep.subr.bf16.mxu1 %v3517_v5 }
 0x114   : > { %3180 = vmatpush3.bf16.msra.mxu0 %v3368_v7  ;;  %3200 = vmatpush3.bf16.msra.mxu1 %v3369_v8 }
 0x115   : > { %3181 = vmatprep.subr.bf16.mxu0 %v3517_v5  ;;  %3201 = vmatprep.subr.bf16.mxu1 %v3517_v5 }
 0x118   : > { %3182 = vmatpush3.bf16.msra.mxu0 %v3370_v9  ;;  %3202 = vmatpush3.bf16.msra.mxu1 %v3371_v10 }
 0x119   : > { %3183 = vmatprep.subr.bf16.mxu0 %v3517_v5  ;;  %3203 = vmatprep.subr.bf16.mxu1 %v3517_v5 }
 0x11c   : > { %3184 = vmatpush3.bf16.msra.mxu0 %v3372_v11  ;;  %3204 = vmatpush3.bf16.msra.mxu1 %v3373_v12 }
 0x11d   : > { %3185 = vmatprep.subr.bf16.mxu0 %v3517_v5  ;;  %3205 = vmatprep.subr.bf16.mxu1 %v3517_v5 }
 0x120   : > { %3186 = vmatpush3.bf16.msra.mxu0 %v3374_v13  ;;  %3206 = vmatpush3.bf16.msra.mxu1 %v3375_v14 }
 0x121   : > { %3187 = vmatprep.subr.bf16.mxu0 %v3517_v5  ;;  %3207 = vmatprep.subr.bf16.mxu1 %v3517_v5 }
 0x124   : > { %3188 = vmatpush3.bf16.msra.mxu0 %v3376_v15  ;;  %3208 = vmatpush3.bf16.msra.mxu1 %v3377_v16 }
 0x125   : > { %3237 = vmatprep.subr.bf16.mxu0 %v3517_v5  ;;  %3213 = vmatprep.subr.bf16.mxu1 %v3517_v5 }
 0x127   : > { %3190 = vmatmul.mubr.bf16.vlgmr.msra.gmra.mxu0 %v3697_v32  ;;  %3210 = vmatmul.mubr.bf16.vlgmr.msra.gmra.mxu1 %v3697_v32 }
 0x128   : > { %3215 = vmatprep.mubr.msk.bf16.mxu1 %vm3518_vm0, %v3517_v5  ;;  %3239 = vmatprep.mubr.msk.bf16.mxu0 %vm3518_vm0, %v3517_v5 }
 0x187   : > { %v3817_v17 = vpop.f32.mrf.mxu0  ;;  %v3819_v18 = vpop.f32.mrf.mxu1 }
 0x188   : > { %v1390_v38 = vsub.f32 0.0, %v3817_v17  ;;  %v1391_v45 = vsub.f32 0.0, %v3819_v18  ;;  %v1431_v9 = vmul.f32 %v1388_v62, %v3817_v17 }
 0x189   : > { %v3071_v19 = vpop.f32.mrf.mxu0  ;;  %v3091_v20 = vpop.f32.mrf.mxu1 }
 0x18a   : > { %v1432_v19 = vmul.f32 %v1388_v62, %v3819_v18 }
 0x18b   : > { %v705_v21 = vpop.f32.mrf.mxu0  ;;  %v793_v22 = vpop.f32.mrf.mxu1 }
 0x18d   : > { %v3072_v23 = vpop.f32.mrf.mxu0  ;;  %v3092_v24 = vpop.f32.mrf.mxu1 }
 0x1a7   : > { %v3821_v25 = vpop.f32.mrf.mxu0  ;;  %v3823_v26 = vpop.f32.mrf.mxu1 }
 0x1a8   : > { %v1392_v41 = vsub.f32 0.0, %v3821_v25  ;;  %v1393_v44 = vsub.f32 0.0, %v3823_v26 }
 0x1a9   : > { %v3111_v27 = vpop.f32.mrf.mxu0  ;;  %v3131_v28 = vpop.f32.mrf.mxu1 }
 0x1ab   : > { %v881_v29 = vpop.f32.mrf.mxu0  ;;  %v969_v30 = vpop.f32.mrf.mxu1 }
 0x1ad   : > { %v3112_v31 = vpop.f32.mrf.mxu0  ;;  %v3132_v32 = vpop.f32.mrf.mxu1 }
 0x1c7   : > { %v1086_v33 = vpop.f32.mrf.mxu0  ;;  %v3825_v34 = vpop.f32.mrf.mxu1 }
 0x1c8   : > { %v1443_v35 = vsub.f32 0.0, %v1086_v33  ;;  %1455 = vrot.lane.b32.xlu1 %v1086_v33, %s3519_s30  ;;  %v1444_v46 = vsub.f32 0.0, %v3825_v34  ;;  %v1463_v0 = vmul.f32 %v1388_v62, %v1086_v33  ;;  %v1464_v27 = vmul.f32 %v1388_v62, %v3825_v34 }
 0x1c9   : > { %v3151_v36 = vpop.f32.mrf.mxu0  ;;  %v3171_v37 = vpop.f32.mrf.mxu1 }
 0x1ca   : > { %1447 = vrot.lane.b32.xlu0 %v1443_v35, %s3520_s13  ;;  %v1433_v35 = vmul.f32 %v1388_v62, %v3821_v25 }
 0x1cb   : > { %v1089_v39 = vpop.f32.mrf.mxu0  ;;  %v1177_v40 = vpop.f32.mrf.mxu1 }
 0x1cc   : > { %1398 = vrot.lane.b32.xlu1 %v1390_v38, %s3520_s13 }
 0x1cd   : > { %v3152_v42 = vpop.f32.mrf.mxu0  ;;  %v3172_v43 = vpop.f32.mrf.mxu1 }
 0x1ce   : > { %1402 = vrot.lane.b32.xlu0 %v1392_v41, %s3520_s13  ;;  %v1434_v42 = vmul.f32 %v1388_v62, %v3823_v26 }
 0x1d0   : > { %1414 = vrot.lane.b32.xlu1 %v3817_v17, %s3519_s30 }
 0x1d2   : > { %1404 = vrot.lane.b32.xlu0 %v1393_v44, %s3520_s13 }
 0x1d4   : > { %1400 = vrot.lane.b32.xlu1 %v1391_v45, %s3520_s13 }
 0x1d8   : > { %1416 = vrot.lane.b32.xlu1 %v3819_v18, %s3519_s30 }
 0x1dc   : > { %1449 = vrot.lane.b32.xlu1 %v1444_v46, %s3520_s13 }
 0x1e0   : > { %1457 = vrot.lane.b32.xlu1 %v3825_v34, %s3519_s30 }
 0x1e4   : > { %1418 = vrot.lane.b32.xlu1 %v3821_v25, %s3519_s30 }
 0x1e7   : > { %v1294_v47 = vpop.f32.mrf.mxu0  ;;  %v1382_v48 = vpop.f32.mrf.mxu1 }
 0x1e8   : > { %v1718_v49 = vpack.c.bf16 %v1294_v47, %v1294_v47  ;;  %v1719_v50 = vpack.c.bf16 %v1382_v48, %v1382_v48  ;;  %1420 = vrot.lane.b32.xlu1 %v3823_v26, %s3519_s30  ;;  %v1658_v26 = vlaneseq }
 0x1e9   : > { %v3191_v51 = vpop.f32.mrf.mxu0  ;;  %v3211_v52 = vpop.f32.mrf.mxu1 }
 0x1ea   : > { %v3837_v53 = vsel %vm1723_vm1, %v1718_v49, 0  ;;  %v3839_v54 = vsel %vm1723_vm1, %v1719_v50, 0  ;;  %v1659_v44 = vshrl.u32 %v1658_v26, 7  ;;  %v1661_v45 = vand.u32 127, %v1658_v26 }
 0x1eb   : > { %v1297_v55 = vpop.f32.mrf.mxu0  ;;  %v1385_v56 = vpop.f32.mrf.mxu1  ;;  %3238 = vmatpush3.bf16.msra.mxu0 %v3837_v53 }
 0x1ec   : > { %3249 = vmatprep.subr.bf16.mxu0 %v3517_v5  ;;  %vm1662_vm4 = vcmp.ge.s32.totalorder %v1659_v44, %v1661_v45  ;;  %v3378_v45 = vld [vmem:[%s3631_s29 + $0x8] sm:$0xff]  }
 0x1ed   : > { %v3192_v57 = vpop.f32.mrf.mxu0  ;;  %v3212_v58 = vpop.f32.mrf.mxu1 }
 0x23a   : > { %v1456_v59 = vpop.permute.xlu1 %1455 }
 0x23c   : > { %v1448_v61 = vpop.permute.xlu0 %1447 }
 0x23d   : > { %v1461_v63 = vsel %vm1426_vm2, %v1448_v61, %v1456_v59 }
 0x23e   : > { %v1465_v1 = vmul.f32 %v1461_v63, %v1389_v60  ;;  %v1399_v2 = vpop.permute.xlu1 %1398 }
 0x240   : > { %v1467_v3 = vadd.f32 %v1465_v1, %v1463_v0  ;;  %v1403_v18 = vpop.permute.xlu0 %1402 }
 0x242   : > { %v1473_v6 = vpack.c.bf16 %v1467_v3, %v1467_v3  ;;  %v1415_v7 = vpop.permute.xlu1 %1414 }
 0x243   : > { %v1427_v8 = vsel %vm1426_vm2, %v1399_v2, %v1415_v7 }
 0x244   : > { %v1435_v10 = vmul.f32 %v1427_v8, %v1389_v60  ;;  %v1480_v11 = vsel %vm1475_vm3, %v1473_v6, 0  ;;  %v1405_v34 = vpop.permute.xlu0 %1404 }
 0x245   : > { %3214 = vmatpush3.bf16.xpose.msra.mxu1 %v1480_v11 }
 0x246   : > { %v1439_v12 = vadd.f32 %v1435_v10, %v1431_v9  ;;  %v1401_v13 = vpop.permute.xlu1 %1400  ;;  %3219 = vmatprep.subr.bf16.mxu1 %v3517_v5 }
 0x248   : > { %v1469_v14 = vpack.c.bf16 %v1439_v12, %v1439_v12 }
 0x24a   : > { %v1417_v15 = vpop.permute.xlu1 %1416 }
 0x24b   : > { %v1428_v16 = vsel %vm1426_vm2, %v1401_v13, %v1417_v15 }
 0x24c   : > { %v1436_v20 = vmul.f32 %v1428_v16, %v1389_v60  ;;  %3216 = vmatmul.mubr.msk.bf16.vlgmr.msra.gmra.mxu1 %vm1475_vm3, %v1469_v14 }
 0x24d   : > { %3220 = vmatpush3.bf16.xpose.msra.mxu1 %v1480_v11  ;;  %3221 = vmatprep.mubr.msk.bf16.mxu1 %vm3518_vm0, %v3517_v5 }
 0x24e   : > { %v1440_v17 = vadd.f32 %v1436_v20, %v1432_v19  ;;  %v1450_v21 = vpop.permute.xlu1 %1449  ;;  %3225 = vmatprep.subr.bf16.mxu1 %v3517_v5 }
 0x250   : > { %v1470_v22 = vpack.c.bf16 %v1440_v17, %v1440_v17 }
 0x252   : > { %v1458_v23 = vpop.permute.xlu1 %1457 }
 0x253   : > { %v1462_v24 = vsel %vm1426_vm2, %v1450_v21, %v1458_v23 }
 0x254   : > { %v1466_v28 = vmul.f32 %v1462_v24, %v1389_v60  ;;  %3222 = vmatmul.mubr.msk.bf16.vlgmr.msra.gmra.mxu1 %vm1475_vm3, %v1470_v22 }
 0x255   : > { %3227 = vmatprep.mubr.msk.bf16.mxu1 %vm3518_vm0, %v3517_v5 }
 0x256   : > { %v1468_v29 = vadd.f32 %v1466_v28, %v1464_v27  ;;  %v1419_v30 = vpop.permute.xlu1 %1418 }
 0x257   : > { %v1429_v31 = vsel %vm1426_vm2, %v1403_v18, %v1419_v30 }
 0x258   : > { %v1474_v32 = vpack.c.bf16 %v1468_v29, %v1468_v29  ;;  %v1437_v33 = vmul.f32 %v1429_v31, %v1389_v60 }
 0x25a   : > { %v1421_v36 = vpop.permute.xlu1 %1420  ;;  %v1569_v37 = vsel %vm1475_vm3, %v1474_v32, 0  ;;  %v1441_v38 = vadd.f32 %v1437_v33, %v1433_v35 }
 0x25b   : > { %3226 = vmatpush3.bf16.xpose.msra.mxu1 %v1569_v37  ;;  %v1430_v39 = vsel %vm1426_vm2, %v1405_v34, %v1421_v36 }
 0x25c   : > { %3231 = vmatprep.subr.bf16.mxu1 %v3517_v5  ;;  %v1471_v40 = vpack.c.bf16 %v1441_v38, %v1441_v38  ;;  %v1438_v41 = vmul.f32 %v1430_v39, %v1389_v60 }
 0x25e   : > { %v1442_v25 = vadd.f32 %v1438_v41, %v1434_v42 }
 0x260   : > { %v1472_v43 = vpack.c.bf16 %v1442_v25, %v1442_v25 }
 0x262   : > { %3228 = vmatmul.mubr.msk.bf16.vlgmr.msra.gmra.mxu1 %vm1475_vm3, %v1471_v40 }
 0x263   : > { %3232 = vmatpush3.bf16.xpose.msra.mxu1 %v1569_v37  ;;  %3233 = vmatprep.mubr.msk.bf16.mxu1 %vm3518_vm0, %v3517_v5 }
 0x264   : > { %3243 = vmatprep.subr.bf16.mxu1 %v3517_v5 }
 0x26a   : > { %3234 = vmatmul.mubr.msk.bf16.vlgmr.msra.gmra.mxu1 %vm1475_vm3, %v1472_v43 }
 0x26b   : > { %3244 = vmatpush3.bf16.msra.mxu1 %v3837_v53  ;;  %3245 = vmatprep.mubr.msk.bf16.mxu1 %vm3518_vm0, %v3517_v5 }
 0x26c   : > { %3255 = vmatprep.subr.bf16.mxu1 %v3517_v5 }
 0x30c   : > { %v1516_v46 = vpop.f32.mrf.mxu1 }
 0x30d   : > { %v1654_v47 = vmul.f32 0.17677669, %v1516_v46 }
 0x30e   : > { %v3217_v48 = vpop.f32.mrf.mxu1 }
 0x30f   : > { %v1665_v49 = vsel %vm1662_vm4, %v1654_v47, -1e+30 }
 0x310   : > { %v1519_v50 = vpop.f32.mrf.mxu1  ;;  %v1670_v51 = vsel %vm1669_vm5, %v1665_v49, -inf }
 0x311   : > { %1671 = vmax.xlane.f32.xlu0 %v1670_v51  ;;  %v3380_v50 = vld [vmem:[%s3631_s29 + $0x18] sm:$0xff]   ;;  %v3381_v51 = vld [vmem:[%s3631_s29 + $0x10] sm:$0xff]  }
 0x312   : > { %v3218_v52 = vpop.f32.mrf.mxu1 }
 0x314   : > { %v1559_v53 = vpop.f32.mrf.mxu1 }
 0x315   : > { %v1655_v55 = vmul.f32 0.17677669, %v1559_v53  ;;  %v3382_v53 = vld [vmem:[%s3631_s29 + $0x28] sm:$0xff]  }
 0x316   : > { %v3223_v56 = vpop.f32.mrf.mxu1 }
 0x317   : > { %v1666_v57 = vsel %vm1662_vm4, %v1655_v55, -1e+30 }
 0x318   : > { %v1562_v58 = vpop.f32.mrf.mxu1  ;;  %v1673_v59 = vsel %vm1669_vm5, %v1666_v57, -inf }
 0x319   : > { %1674 = vmax.xlane.f32.xlu1 %v1673_v59  ;;  %v3383_v58 = vld [vmem:[%s3631_s29 + $0x20] sm:$0xff]  }
 0x31a   : > { %v3224_v60 = vpop.f32.mrf.mxu1 }
 0x322   : > { %v1605_v61 = vpop.f32.mrf.mxu1 }
 0x323   : > { %v1656_v62 = vmul.f32 0.17677669, %v1605_v61  ;;  %v3384_v61 = vld [vmem:[%s3631_s29 + $0x38] sm:$0xff]  }
 0x324   : > { %v3229_v63 = vpop.f32.mrf.mxu1 }
 0x325   : > { %v1667_v0 = vsel %vm1662_vm4, %v1656_v62, -1e+30 }
 0x326   : > { %v1608_v1 = vpop.f32.mrf.mxu1  ;;  %v1676_v2 = vsel %vm1669_vm5, %v1667_v0, -inf }
 0x327   : > { %1677 = vmax.xlane.f32.xlu0 %v1676_v2  ;;  %v3385_v1 = vld [vmem:[%s3631_s29 + $0x30] sm:$0xff]  }
 0x328   : > { %v3230_v3 = vpop.f32.mrf.mxu1 }
 0x32a   : > { %v1648_v6 = vpop.f32.mrf.mxu1 }
 0x32b   : > { %v1657_v7 = vmul.f32 0.17677669, %v1648_v6 }
 0x32c   : > { %v3235_v8 = vpop.f32.mrf.mxu1 }
 0x32d   : > { %v1668_v9 = vsel %vm1662_vm4, %v1657_v7, -1e+30 }
 0x32e   : > { %v1651_v10 = vpop.f32.mrf.mxu1  ;;  %v1679_v11 = vsel %vm1669_vm5, %v1668_v9, -inf }
 0x32f   : > { %1680 = vmax.xlane.f32.xlu0 %v1679_v11 }
 0x330   : > { %v3236_v12 = vpop.f32.mrf.mxu1 }
 0x39a   : > { %v1672_v13 = vpop.xlane.xlu0 %1671 }
 0x39b   : > { %v1682_v14 = vsub.f32 %v1665_v49, %v1672_v13  ;;  %v3379_v49 = vld [vmem:[%s3631_s29] sm:$0xff]  }
 0x39d   : > { %v1686_v15 = vmul.f32 1.442695, %v1682_v14  ;;  %v3386_v14 = vld [vmem:[%s3636_s15 + $0xe0] ss:$16 sps:$4 sm:$0xff]  }
 0x39f   : > { %3452 = vpow2.f32 %v1686_v15  ;;  %v3388_v15 = vld [vmem:[%s3636_s15 + $0xe4] ss:$16 sps:$4 sm:$0xff]  }
 0x3a2   : > { %v1675_v16 = vpop.xlane.xlu1 %1674 }
 0x3a3   : > { %v1683_v19 = vsub.f32 %v1666_v57, %v1675_v16  ;;  %v3389_v16 = vld [vmem:[%s3636_s15 + $0xe8] ss:$16 sps:$4 sm:$0xff]  }
 0x3a5   : > { %v1688_v20 = vmul.f32 1.442695, %v1683_v19  ;;  %v3391_v19 = vld [vmem:[%s3636_s15 + $0xec] ss:$16 sps:$4 sm:$0xff]  }
 0x3a7   : > { %3454 = vpow2.f32 %v1688_v20  ;;  %v3394_v20 = vld [vmem:[%s3636_s15 + $0xc4] ss:$16 sps:$4 sm:$0xff]  }
 0x3ac   : > { %v3453_v17 = vpop.eup %3452 }
 0x3ad   : > { %v1694_v21 = vsel %vm1669_vm5, %v3453_v17, 0.0 }
 0x3ae   : > { %1695 = vadd.xlane.f32.xlu1 %v1694_v21  ;;  %v3392_v21 = vld [vmem:[%s3636_s15 + $0xc0] ss:$16 sps:$4 sm:$0xff]  }
 0x3b0   : > { %v1678_v22 = vpop.xlane.xlu0 %1677 }
 0x3b1   : > { %v1684_v23 = vsub.f32 %v1667_v0, %v1678_v22  ;;  %v3395_v22 = vld [vmem:[%s3636_s15 + $0xc8] ss:$16 sps:$4 sm:$0xff]  }
 0x3b3   : > { %v1690_v24 = vmul.f32 1.442695, %v1684_v23 }
 0x3b4   : > { %v3455_v27 = vpop.eup %3454 }
 0x3b5   : > { %3456 = vpow2.f32 %v1690_v24  ;;  %v1697_v28 = vsel %vm1669_vm5, %v3455_v27, 0.0 }
 0x3b6   : > { %1698 = vadd.xlane.f32.xlu0 %v1697_v28 }
 0x3b8   : > { %v1681_v18 = vpop.xlane.xlu0 %1680 }
 0x3b9   : > { %v1685_v29 = vsub.f32 %v1668_v9, %v1681_v18 }
 0x3bb   : > { %v1692_v30 = vmul.f32 1.442695, %v1685_v29 }
 0x3bd   : > { %3458 = vpow2.f32 %v1692_v30 }
 0x3c2   : > { %v3457_v31 = vpop.eup %3456 }
 0x3c3   : > { %v1700_v32 = vsel %vm1669_vm5, %v3457_v31, 0.0 }
 0x3c4   : > { %1701 = vadd.xlane.f32.xlu1 %v1700_v32 }
 0x3ca   : > { %v3459_v33 = vpop.eup %3458 }
 0x3cb   : > { %v1703_v35 = vsel %vm1669_vm5, %v3459_v33, 0.0 }
 0x3cc   : > { %1704 = vadd.xlane.f32.xlu0 %v1703_v35 }
 0x437   : > { %v1696_v36 = vpop.xlane.xlu1 %1695 }
 0x438   : > { %3460 = vrcp.f32 %v1696_v36 }
 0x43f   : > { %v1699_v37 = vpop.xlane.xlu0 %1698 }
 0x440   : > { %3462 = vrcp.f32 %v1699_v37 }
 0x445   : > { %v3461_v34 = vpop.eup %3460 }
 0x446   : > { %v1710_v38 = vmul.f32 %v3461_v34, %v3453_v17  ;;  %v3397_v17 = vld [vmem:[%s3636_s15 + $0xcc] ss:$16 sps:$4 sm:$0xff]  }
 0x448   : > { %v1714_v39 = vpack.c.bf16 %v1710_v38, %v1710_v38 }
 0x44a   : > { %3240 = vmatmul.mubr.msk.bf16.vlgmr.msra.gmra.mxu0 %vm1669_vm5, %v1714_v39 }
 0x44b   : > { %3250 = vmatpush3.bf16.msra.mxu0 %v3839_v54  ;;  %3251 = vmatprep.mubr.msk.bf16.mxu0 %vm3518_vm0, %v3517_v5 }
 0x44c   : > { %3261 = vmatprep.subr.bf16.mxu0 %v3517_v5 }
 0x44d   : > { %v3463_v40 = vpop.eup %3462  ;;  %v1702_v41 = vpop.xlane.xlu1 %1701 }
 0x44e   : > { %3464 = vrcp.f32 %v1702_v41  ;;  %v1711_v42 = vmul.f32 %v3463_v40, %v3455_v27 }
 0x450   : > { %v1715_v25 = vpack.c.bf16 %v1711_v42, %v1711_v42 }
 0x452   : > { %3246 = vmatmul.mubr.msk.bf16.vlgmr.msra.gmra.mxu1 %vm1669_vm5, %v1715_v25 }
 0x453   : > { %3256 = vmatpush3.bf16.msra.mxu1 %v3839_v54  ;;  %3257 = vmatprep.mubr.msk.bf16.mxu1 %vm3518_vm0, %v3517_v5 }
 0x454   : > { %3269 = vmatprep.subr.bf16.mxu1 %v3517_v5 }
 0x455   : > { %v1705_v43 = vpop.xlane.xlu0 %1704 }
 0x456   : > { %3466 = vrcp.f32 %v1705_v43 }
 0x45b   : > { %v3465_v26 = vpop.eup %3464 }
 0x45c   : > { %v1712_v44 = vmul.f32 %v3465_v26, %v3457_v31  ;;  %v3400_v26 = vld [vmem:[%s3636_s15 + $0xa4] ss:$16 sps:$4 sm:$0xff]  }
 0x45e   : > { %v1716_v46 = vpack.c.bf16 %v1712_v44, %v1712_v44  ;;  %v3403_v44 = vld [vmem:[%s3636_s15 + $0xac] ss:$16 sps:$4 sm:$0xff]  }
 0x460   : > { %3252 = vmatmul.mubr.msk.bf16.vlgmr.msra.gmra.mxu0 %vm1669_vm5, %v1716_v46  ;;  %v3401_v46 = vld [vmem:[%s3636_s15 + $0xa8] ss:$16 sps:$4 sm:$0xff]  }
 0x461   : > { %3262 = vmatpush3.bf16.msra.mxu0 %v3378_v45  ;;  %3265 = vmatprep.mubr.msk.bf16.mxu0 %vm3518_vm0, %v3517_v5  ;;  %v3398_v45 = vld [vmem:[%s3636_s15 + $0xa0] ss:$16 sps:$4 sm:$0xff]  }
 0x462   : > { %3263 = vmatprep.subr.bf16.mxu0 %v3517_v5 }
 0x463   : > { %v3467_v54 = vpop.eup %3466 }
 0x464   : > { %v1713_v47 = vmul.f32 %v3467_v54, %v3459_v33  ;;  %v3409_v54 = vld [vmem:[%s3636_s15 + $0x8c] ss:$16 sps:$4 sm:$0xff]  }
 0x465   : > { %3264 = vmatpush3.bf16.msra.mxu0 %v3379_v49  ;;  %v3412_v49 = vld [vmem:[%s3636_s15 + $0x64] ss:$16 sps:$4 sm:$0xff]  }
 0x466   : > { %v1717_v48 = vpack.c.bf16 %v1713_v47, %v1713_v47  ;;  %3277 = vmatprep.subr.bf16.mxu0 %v3517_v5  ;;  %v3404_v47 = vld [vmem:[%s3636_s15 + $0x80] ss:$16 sps:$4 sm:$0xff]  }
 0x468   : > { %3258 = vmatmul.mubr.msk.bf16.vlgmr.msra.gmra.mxu1 %vm1669_vm5, %v1717_v48  ;;  %v3407_v48 = vld [vmem:[%s3636_s15 + $0x88] ss:$16 sps:$4 sm:$0xff]  }
 0x469   : > { %3273 = vmatprep.mubr.msk.bf16.mxu1 %vm3518_vm0, %v3517_v5  ;;  %3270 = vmatpush3.bf16.msra.mxu1 %v3380_v50  ;;  %v3415_v50 = vld [vmem:[%s3636_s15 + $0x6c] ss:$16 sps:$4 sm:$0xff]  }
 0x46a   : > { %3271 = vmatprep.subr.bf16.mxu1 %v3517_v5 }
 0x46d   : > { %3272 = vmatpush3.bf16.msra.mxu1 %v3381_v51  ;;  %v3410_v51 = vld [vmem:[%s3636_s15 + $0x60] ss:$16 sps:$4 sm:$0xff]  }
 0x46e   : > { %3285 = vmatprep.subr.bf16.mxu1 %v3517_v5 }
 0x50a   : > { %v1761_v52 = vpop.f32.mrf.mxu0 }
 0x50b   : > { %v1899_v55 = vpack.c.bf16 %v1761_v52, %v1761_v52  ;;  %v3413_v52 = vld [vmem:[%s3636_s15 + $0x68] ss:$16 sps:$4 sm:$0xff]  }
 0x50c   : > { %v3241_v56 = vpop.f32.mrf.mxu0 }
 0x50d   : > { %3266 = vmatmul.mubr.msk.bf16.vlgmr.msra.gmra.mxu0 %vm1475_vm3, %v1899_v55  ;;  %v3421_v55 = vld [vmem:[%s3636_s15 + $0x4c] ss:$16 sps:$4 sm:$0xff]   ;;  %v3416_v56 = vld [vmem:[%s3636_s15 + $0x40] ss:$16 sps:$4 sm:$0xff]  }
 0x50e   : > { %v1764_v57 = vpop.f32.mrf.mxu0  ;;  %3278 = vmatpush3.bf16.msra.mxu0 %v3382_v53  ;;  %3281 = vmatprep.mubr.msk.bf16.mxu0 %vm3518_vm0, %v3517_v5  ;;  %v3418_v53 = vld [vmem:[%s3636_s15 + $0x44] ss:$16 sps:$4 sm:$0xff]  }
 0x50f   : > { %3279 = vmatprep.subr.bf16.mxu0 %v3517_v5  ;;  %v3419_v57 = vld [vmem:[%s3636_s15 + $0x48] ss:$16 sps:$4 sm:$0xff]  }
 0x510   : > { %v3242_v59 = vpop.f32.mrf.mxu0 }
 0x511   : > { %v3427_v59 = vld [vmem:[%s3636_s15 + $0x2c] ss:$16 sps:$4 sm:$0xff]  }
 0x512   : > { %v1804_v60 = vpop.f32.mrf.mxu1  ;;  %3280 = vmatpush3.bf16.msra.mxu0 %v3383_v58  ;;  %v3424_v58 = vld [vmem:[%s3636_s15 + $0x24] ss:$16 sps:$4 sm:$0xff]  }
 0x513   : > { %v1900_v62 = vpack.c.bf16 %v1804_v60, %v1804_v60  ;;  %2351 = vmatprep.subr.bf16.mxu0 %v3388_v15  ;;  %v3521_v60 = vmov 0   ;;  %v3437_v15 = vld [vmem:[%s3641_s18 + $0x30] sm:$0xff]  }
 0x514   : > { %v3247_v63 = vpop.f32.mrf.mxu1 }
 0x515   : > { %3274 = vmatmul.mubr.msk.bf16.vlgmr.msra.gmra.mxu1 %vm1475_vm3, %v1900_v62  ;;  %v3425_v62 = vld [vmem:[%s3636_s15 + $0x28] ss:$16 sps:$4 sm:$0xff]   ;;  %v3430_v63 = vld [vmem:[%s3636_s15 + $0x4] ss:$16 sps:$4 sm:$0xff]  }
 0x516   : > { %v1807_v0 = vpop.f32.mrf.mxu1  ;;  %3286 = vmatpush3.bf16.msra.mxu1 %v3384_v61  ;;  %3289 = vmatprep.mubr.msk.bf16.mxu1 %vm3518_vm0, %v3517_v5  ;;  %v3422_v61 = vld [vmem:[%s3636_s15 + $0x20] ss:$16 sps:$4 sm:$0xff]  }
 0x517   : > { %3287 = vmatprep.subr.bf16.mxu1 %v3517_v5  ;;  %v3433_v0 = vld [vmem:[%s3636_s15 + $0xc] ss:$16 sps:$4 sm:$0xff]  }
 0x518   : > { %v3248_v2 = vpop.f32.mrf.mxu1 }
 0x519   : > { %v3431_v2 = vld [vmem:[%s3636_s15 + $0x8] ss:$16 sps:$4 sm:$0xff]  }
 0x51a   : > { %3288 = vmatpush3.bf16.msra.mxu1 %v3385_v1  ;;  %v3428_v1 = vld [vmem:[%s3636_s15] ss:$16 sps:$4 sm:$0xff]  }
 0x51b   : > { %2392 = vmatprep.subr.bf16.mxu1 %v3391_v19  ;;  %v3439_v19 = vld [vmem:[%s3641_s18 + $0x28] sm:$0xff]  }
 0x520   : > { %v1850_v3 = vpop.f32.mrf.mxu0 }
 0x521   : > { %v1901_v6 = vpack.c.bf16 %v1850_v3, %v1850_v3 }
 0x522   : > { %v3253_v7 = vpop.f32.mrf.mxu0 }
 0x523   : > { %3282 = vmatmul.mubr.msk.bf16.vlgmr.msra.gmra.mxu0 %vm1475_vm3, %v1901_v6 }
 0x524   : > { %v1853_v8 = vpop.f32.mrf.mxu0  ;;  %2352 = vmatpush1.bf16.msra.mxu0 %v3386_v14  ;;  %2383 = vmatprep.mubr.bf16.mxu0 %v3521_v60  ;;  %v3436_v14 = vld [vmem:[%s3641_s18 + $0x70] sm:$0xff]  }
 0x525   : > { %2353 = vmatprep.subr.bf16.mxu0 %v3394_v20  ;;  %v3440_v20 = vld [vmem:[%s3641_s18 + $0x60] sm:$0xff]  }
 0x526   : > { %v3254_v9 = vpop.f32.mrf.mxu0 }
 0x527   : > { %v2868_v9 = vld [vmem:[%s4028_s14] ss:$0 sm:$0xff] }
 0x528   : > { %v1893_v10 = vpop.f32.mrf.mxu1  ;;  %2354 = vmatpush1.bf16.msra.mxu0 %v3392_v21  ;;  %v3442_v21 = vld [vmem:[%s3641_s18 + $0x58] sm:$0xff]  }
 0x529   : > { %v1902_v11 = vpack.c.bf16 %v1893_v10, %v1893_v10  ;;  %2355 = vmatprep.subr.bf16.mxu0 %v3400_v26 }
 0x52a   : > { %v3259_v12 = vpop.f32.mrf.mxu1 }
 0x52b   : > { %3290 = vmatmul.mubr.msk.bf16.vlgmr.msra.gmra.mxu1 %vm1475_vm3, %v1902_v11 }
 0x52c   : > { %v1896_v5 = vpop.f32.mrf.mxu1  ;;  %2393 = vmatpush1.bf16.msra.mxu1 %v3389_v16  ;;  %2356 = vmatpush1.bf16.msra.mxu0 %v3398_v45  ;;  %v3438_v16 = vld [vmem:[%s3641_s18 + $0x68] sm:$0xff]  }
 0x52d   : > { %2394 = vmatprep.subr.bf16.mxu1 %v3397_v17  ;;  %2424 = vmatprep.mubr.bf16.mxu1 %v3521_v60  ;;  %v3434_v5 = vld [vmem:[%s3641_s18 + $0x78] sm:$0xff]   ;;  %v3441_v17 = vld [vmem:[%s3641_s18 + $0x20] sm:$0xff]  }
 0x52e   : > { %v3260_v13 = vpop.f32.mrf.mxu1 }
 0x52f   : > { %v3435_v13 = vld [vmem:[%s3641_s18 + $0x38] sm:$0xff]  }
 0x530   : > { %2395 = vmatpush1.bf16.msra.mxu1 %v3395_v22  ;;  %v3443_v22 = vld [vmem:[%s3641_s18 + $0x18] sm:$0xff]  }
 0x531   : > { %2396 = vmatprep.subr.bf16.mxu1 %v3403_v44 }
 0x534   : > { %2397 = vmatpush1.bf16.msra.mxu1 %v3401_v46 }
 0x535   : > { %2398 = vmatprep.subr.bf16.mxu1 %v3409_v54 }
 0x538   : > { %2399 = vmatpush1.bf16.msra.mxu1 %v3407_v48 }
 0x539   : > { %2400 = vmatprep.subr.bf16.mxu1 %v3415_v50 }
 0x53c   : > { %2401 = vmatpush1.bf16.msra.mxu1 %v3413_v52 }
 0x53d   : > { %2402 = vmatprep.subr.bf16.mxu1 %v3421_v55 }
 0x540   : > { %2403 = vmatpush1.bf16.msra.mxu1 %v3419_v57 }
 0x541   : > { %2404 = vmatprep.subr.bf16.mxu1 %v3427_v59 }
 0x544   : > { %2405 = vmatpush1.bf16.msra.mxu1 %v3425_v62 }
 0x545   : > { %2406 = vmatprep.subr.bf16.mxu1 %v3433_v0 }
 0x548   : > { %2407 = vmatpush1.bf16.msra.mxu1 %v3431_v2 }
 0x5cd   : > { %v1968_v23 = vpop.f32.mrf.mxu0 }
 0x5cf   : > { %v3267_v24 = vpop.f32.mrf.mxu0 }
 0x5d0   : > { %v3445_v24 = vld [vmem:[%s3641_s18 + $0x10] sm:$0xff]  }
 0x5d1   : > { %v1971_v27 = vpop.f32.mrf.mxu0 }
 0x5d2   : > { %v3446_v27 = vld [vmem:[%s3641_s18 + $0x48] sm:$0xff]  }
 0x5d3   : > { %v3268_v28 = vpop.f32.mrf.mxu0 }
 0x5d4   : > { %v3447_v28 = vld [vmem:[%s3641_s18 + $0x8] sm:$0xff]  }
 0x5d5   : > { %v2023_v18 = vpop.f32.mrf.mxu1 }
 0x5d6   : > { %v2139_v36 = vadd.f32 %v2023_v18, %v1968_v23  ;;  %v3444_v23 = vld [vmem:[%s3641_s18 + $0x50] sm:$0xff]   ;;  %v3448_v18 = vld [vmem:[%s3641_s18 + $0x40] sm:$0xff]  }
 0x5d7   : > { %v3275_v29 = vpop.f32.mrf.mxu1 }
 0x5d8   : > { %v3449_v29 = vld [vmem:[%s3641_s18] sm:$0xff]  }
 0x5d9   : > { %v2026_v30 = vpop.f32.mrf.mxu1 }
 0x5db   : > { %v3276_v31 = vpop.f32.mrf.mxu1 }
 0x5e3   : > { %v2078_v32 = vpop.f32.mrf.mxu0 }
 0x5e4   : > { %v2140_v34 = vadd.f32 %v2139_v36, %v2078_v32 }
 0x5e5   : > { %v3283_v33 = vpop.f32.mrf.mxu0 }
 0x5e7   : > { %v2081_v35 = vpop.f32.mrf.mxu0 }
 0x5e9   : > { %v3284_v37 = vpop.f32.mrf.mxu0 }
 0x5eb   : > { %v2133_v38 = vpop.f32.mrf.mxu1 }
 0x5ec   : > { %v2141_v39 = vadd.f32 %v2140_v34, %v2133_v38 }
 0x5ed   : > { %v3291_v40 = vpop.f32.mrf.mxu1 }
 0x5ee   : > { %v3939_v41 = vadd.f32 %v2141_v39, %v3647_v4  ;;  %v3406_v4 = vld [vmem:[%s3636_s15 + $0x84] ss:$16 sps:$4 sm:$0xff]  }
 0x5ef   : > { %v2136_v42 = vpop.f32.mrf.mxu1  ;;  %2357 = vmatprep.subr.bf16.mxu0 %v3406_v4 }
 0x5f0   : > { %2620 = vst [vmem:[#allocation3] sm:$0xff] %v3939_v41  ;;  %v2144_v25 = vmul.f32 %v3939_v41, %v3939_v41  ;;  %2358 = vmatpush1.bf16.msra.mxu0 %v3404_v47 }
 0x5f1   : > { %v3292_v43 = vpop.f32.mrf.mxu1  ;;  %2359 = vmatprep.subr.bf16.mxu0 %v3412_v49 }
 0x5f2   : > { %2145 = vadd.xlane.f32.xlu1 %v2144_v25 }
 0x5f4   : > { %2360 = vmatpush1.bf16.msra.mxu0 %v3410_v51 }
 0x5f5   : > { %2361 = vmatprep.subr.bf16.mxu0 %v3418_v53 }
 0x5f8   : > { %2362 = vmatpush1.bf16.msra.mxu0 %v3416_v56 }
 0x5f9   : > { %2363 = vmatprep.subr.bf16.mxu0 %v3424_v58 }
 0x5fc   : > { %2364 = vmatpush1.bf16.msra.mxu0 %v3422_v61 }
 0x5fd   : > { %2365 = vmatprep.subr.bf16.mxu0 %v3430_v63 }
 0x600   : > { %2366 = vmatpush1.bf16.msra.mxu0 %v3428_v1 }
 0x601   : > { %3031 = vmatprep.subr.bf16.mxu0 %v3434_v5 }
 0x67b   : > { %v2146_v3 = vpop.xlane.xlu1 %2145 }
 0x67c   : > { %v2147_v6 = vmul.f32 0.0078125, %v2146_v3 }
 0x67e   : > { %v2148_v7 = vadd.f32 1e-05, %v2147_v6 }
 0x680   : > { %3468 = vrsqrt.f32 %v2148_v7 }
 0x68d   : > { %v3469_v8 = vpop.eup %3468 }
 0x68e   : > { %v2150_v10 = vmul.f32 %v3469_v8, %v3939_v41 }
 0x690   : > { %v2157_v11 = vmul.f32 %v2868_v9, %v2150_v10 }
 0x692   : > { %v2158_v12 = vpack.c.bf16 %v2157_v11, %v2157_v11 }
 0x694   : > { %2384 = vmatmul.mubr.bf16.vlgmr.msra.gmra.mxu0 %v2158_v12  ;;  %2425 = vmatmul.mubr.bf16.vlgmr.msra.gmra.mxu1 %v2158_v12 }
 0x695   : > { %3032 = vmatpush3.bf16.msra.mxu0 %v3435_v13 }
 0x696   : > { %3033 = vmatprep.subr.bf16.mxu0 %v3436_v14 }
 0x699   : > { %3034 = vmatpush3.bf16.msra.mxu0 %v3437_v15 }
 0x69a   : > { %3035 = vmatprep.subr.bf16.mxu0 %v3438_v16 }
 0x69d   : > { %3036 = vmatpush3.bf16.msra.mxu0 %v3439_v19 }
 0x69e   : > { %3037 = vmatprep.subr.bf16.mxu0 %v3440_v20 }
 0x6a1   : > { %3038 = vmatpush3.bf16.msra.mxu0 %v3441_v17 }
 0x6a2   : > { %3039 = vmatprep.subr.bf16.mxu0 %v3442_v21 }
 0x6a5   : > { %3040 = vmatpush3.bf16.msra.mxu0 %v3443_v22 }
 0x6a6   : > { %3041 = vmatprep.subr.bf16.mxu0 %v3444_v23 }
 0x6a9   : > { %3042 = vmatpush3.bf16.msra.mxu0 %v3445_v24 }
 0x6aa   : > { %3043 = vmatprep.subr.bf16.mxu0 %v3446_v27 }
 0x6ad   : > { %3044 = vmatpush3.bf16.msra.mxu0 %v3447_v28 }
 0x6ae   : > { %3045 = vmatprep.subr.bf16.mxu0 %v3448_v18 }
 0x6b1   : > { %3046 = vmatpush3.bf16.msra.mxu0 %v3449_v29 }
 0x754   : > { %v2385_v30 = vpop.f32.mrf.mxu0  ;;  %v2426_v31 = vpop.f32.mrf.mxu1 }
 0x755   : > { %v2901_v32 = vmul.f32 -1.442695, %v2385_v30 }
 0x756   : > { %v2387_v33 = vpop.f32.mrf.mxu0  ;;  %v2428_v35 = vpop.f32.mrf.mxu1 }
 0x757   : > { %3470 = vpow2.f32 %v2901_v32  ;;  %v2902_v36 = vmul.f32 -1.442695, %v2387_v33 }
 0x758   : > { %v2389_v37 = vpop.f32.mrf.mxu0  ;;  %v2430_v34 = vpop.f32.mrf.mxu1 }
 0x759   : > { %3472 = vpow2.f32 %v2902_v36 }
 0x75a   : > { %v2390_v38 = vpop.f32.mrf.mxu0  ;;  %v2431_v39 = vpop.f32.mrf.mxu1 }
 0x764   : > { %v3471_v40 = vpop.eup %3470 }
 0x765   : > { %v2439_v42 = vadd.f32 1.0, %v3471_v40 }
 0x766   : > { %v3473_v25 = vpop.eup %3472 }
 0x767   : > { %3474 = vrcp.f32 %v2439_v42  ;;  %v2440_v43 = vadd.f32 1.0, %v3473_v25 }
 0x769   : > { %3476 = vrcp.f32 %v2440_v43 }
 0x774   : > { %v3475_v26 = vpop.eup %3474 }
 0x775   : > { %v2445_v44 = vmul.f32 %v3475_v26, %v2385_v30 }
 0x776   : > { %v3477_v45 = vpop.eup %3476 }
 0x777   : > { %v2446_v46 = vmul.f32 %v3477_v45, %v2387_v33  ;;  %v2447_v4 = vmul.f32 %v2445_v44, %v2426_v31 }
 0x779   : > { %v2448_v54 = vmul.f32 %v2446_v46, %v2428_v35  ;;  %v2449_v48 = vpack.c.bf16 %v2447_v4, %v2447_v4 }
 0x77b   : > { %v2450_v47 = vpack.c.bf16 %v2448_v54, %v2448_v54 }
 0x77d   : > { %2611 = vmatprep.mubr.bf16.mxu0 %v2450_v47 }
 0x77e   : > { %2612 = vmatmul.mubr.bf16.vlgmr.msra.gmra.mxu0 %v2449_v48 }
 0x83e   : > { %v3047_v49 = vpop.f32.mrf.mxu0 }
 0x840   : > { %v3048_v50 = vpop.f32.mrf.mxu0  ;;  %2624 = sbr.rel (%p2919_p5) target bundleno = 2282 (0x8ea), region = 76 }
 0x841   : > { %v3049_v51 = vadd.f32 %v3048_v50, %v3047_v49 }
 0x842   : > { %v3050_v52 = vpop.f32.mrf.mxu0 }
 0x843   : > { %2619 = vst [vmem:[#allocation2] sm:$0xff] %v3049_v51 }
 0x844   : > { %v3051_v53 = vpop.f32.mrf.mxu0 }
 0x845   : > { %v2625_v55 = vadd.f32 %v3049_v51, %v3939_v41  ;;  %v2920_v61 = vld [vmem:[%s4021_s11] ss:$0 sm:$0xff] }
 0x847   : > { %v2627_v56 = vmul.f32 %v2625_v55, %v2625_v55 }
 0x849   : > { %2628 = vadd.xlane.f32.xlu0 %v2627_v56 }
 0x8d2   : > { %v2629_v57 = vpop.xlane.xlu0 %2628 }
 0x8d3   : > { %v2630_v58 = vmul.f32 0.0078125, %v2629_v57 }
 0x8d5   : > { %v2631_v59 = vadd.f32 1e-05, %v2630_v58 }
 0x8d7   : > { %3478 = vrsqrt.f32 %v2631_v59 }
 0x8e4   : > { %v3479_v60 = vpop.eup %3478 }
 0x8e5   : > { %v2633_v62 = vmul.f32 %v3479_v60, %v2625_v55 }
 0x8e7   : > { %v2640_v63 = vmul.f32 %v2920_v61, %v2633_v62 }
 0x8e9   : > { %2641 = vst [vmem:[#allocation4] sm:$0xff] %v2640_v63 }
 0x8ea PF: > { %p3297_p6 = scmp.eq.s32.totalorder %s3594_s22, 1  ;;  %s3522_s17 = smov [#allocation4]  }
 0x8eb   : > { %s2649_s18 = sshll.u32 %s3522_s17, 4  ;;  %s2650_s18 = int_to_ptr.vmem [resolvable:$true] %s2649_s18 }
 0x8ec   : > { %s3480_s20 = scalar_lea.vmem %s2650_s18, 128  ;;  %p3487_p10 = scmp.lt.s32.totalorder %s2650_s18, %s2650_s18 }
 0x8ed   : > { %p3481_p7 = scmp.ne.s32.totalorder %s2650_s18, %s3480_s20  ;;  %p3488_p11 = scmp.lt.s32.totalorder %s3480_s20, %s3480_s20 }
 0x8ef   : > { %p3482_p8 = pnand %p3481_p7, %p3297_p6  ;;  %p3489_p12 = por %p3488_p11, %p3487_p10 }
 0x8f1   : > { %p3483_p9 = pneg %p3482_p8 }
 0x8f3   : > { %p3490_p13 = pnand %p3489_p12, %p3483_p9 }
 0x8f5   : > { %3493 = shalt.err (!%p3490_p13)
}
 0x8f6   : > { %3294 = dma.vmem_to_hbm [thread:$0]  (%p3297_p6), %s2650_s18, 128, %s4022_s12, [#allocation5]  }
 0x8f7   : > { %3509 = dma.done.wait (%p3297_p6), [#allocation5], 128  }
 0x8f8   : > { %3511 = vsyncadd (%p3297_p6), [#allocation5], 4294967168 }
 0x8f9 PF: > { %s4029_s21 = sld [smem:[#allocation7_spill]] }
 0x8ff   : > { %s23_s21 = sadd.s32 1, %s4029_s21  }
 0x900   : > { %p20_p0 = scmp.ge.s32.totalorder %s23_s21, 4  }
 0x902   :  { %22 = sbr.rel (!%p20_p0) target bundleno = 3 (0x3), region = 124 }
 0x907   :  { %2662 = vsyncpa [#allocation5], 1 }
 0x908   :  { %2664 = vsyncpa [#allocation5 + $0x1], 1 }

</bundles_post_ra>
